<compile_context>
chip_gen: v7x
topology: tpu7x:2x2x1
jax: 0.10.0
libtpu: 0.0.40
codegen_flags: <defaults>
</compile_context>

<pallas_src>
import functools
import math

import jax
import jax.numpy as jnp
from jax.experimental import pallas as pl
from jax.experimental.pallas import tpu as pltpu

BN_EPS = 1e-5
BN_SCALE = 1.0 / math.sqrt(1.0 + BN_EPS)  # eval-mode BatchNorm1d, running_mean=0 / running_var=1
# BN folding pushes this scale into the NEXT layer's weights; requires a positive scale
# (std(s*h) == s*std(h) only for s > 0).
assert BN_SCALE > 0.0

K1, D1 = 5, 1       # tdnn1 kernel size / dilation
K2, D2 = 5, 2       # tdnn2 kernel size / dilation
C_IN = 30


def _tdnn_kernel(xcols_ref, w1_ref, b1_ref, w2_ref, b2_ref, w3_ref, b3_ref,
                 fc1wm_ref, fc1ws_ref, fc1b_ref, fc2w_ref, fc2b_ref,
                 fc3w_ref, fc3b_ref, out_ref, mean_scr, std_scr, *, B, T1p, T2):
    # xcols_ref: (1, B*T1p, K1*30) bf16 im2col'd input for B samples (grid axis = batch blocks).
    # T1p = per-sample frame count padded to a multiple of 8; valid output frames per sample = T2.
    L = B * T1p - D2 * (K2 - 1)          # rows carried through tdnn2/3 (flattened batch*time)

    # ---- tdnn1: single fused matmul over all B samples' frames ----
    xc = xcols_ref[0]                                                        # (B*T1p, 150) bf16
    h = jnp.dot(xc, w1_ref[...], preferred_element_type=jnp.float32)
    h = jnp.maximum(h.astype(jnp.bfloat16) + b1_ref[...], 0.0)              # (B*T1p, 128) bf16

    # ---- tdnn2: im2col on the flattened (batch*time) axis, lane-aligned bf16 concat ----
    # For every valid frame (t < T2 within a sample), t + k*D2 <= T1-1 < T1p, so taps never
    # cross a sample boundary; cross-boundary garbage lands only in rows pooling never reads.
    h_cols = jnp.concatenate([h[k * D2:k * D2 + L, :] for k in range(K2)],
                             axis=-1)                                        # (L, 640) bf16
    h2 = jnp.dot(h_cols, w2_ref[...], preferred_element_type=jnp.float32)
    h2 = jnp.maximum(h2.astype(jnp.bfloat16) + b2_ref[...], 0.0)            # (L, 128) bf16

    # ---- tdnn3: k=1 conv == plain matmul; keep epilogue in f32 for the stats pooling ----
    h3 = jnp.dot(h2, w3_ref[...], preferred_element_type=jnp.float32)
    h3 = jnp.maximum(h3 + b3_ref[...], 0.0)                                  # (L, 128) f32

    # ---- statistics pooling: two-pass (mean, then centered sum-of-squares) per sample ----
    inv_t = 1.0 / T2
    inv_tm1 = 1.0 / (T2 - 1)
    for b in range(B):                                # B is small & static -> cheap unrolled XLU work
        sl = h3[b * T1p:b * T1p + T2, :]              # only the T2 valid frames of sample b
        m = jnp.sum(sl, axis=0, keepdims=True) * inv_t                       # (1, 128)
        c = sl - m
        v = jnp.sum(c * c, axis=0, keepdims=True) * inv_tm1
        mean_scr[pl.ds(b, 1), :] = m
        std_scr[pl.ds(b, 1), :] = jnp.sqrt(v)

    mean_bf = mean_scr[...].astype(jnp.bfloat16)                             # (B, 128)
    std_bf = std_scr[...].astype(jnp.bfloat16)                               # (B, 128)

    # ---- fc1 on concat([mean, std]) without materializing the concat (batched GEMM, M=B) ----
    z = (jnp.dot(mean_bf, fc1wm_ref[...], preferred_element_type=jnp.float32)
         + jnp.dot(std_bf, fc1ws_ref[...], preferred_element_type=jnp.float32)
         + fc1b_ref[...])
    z = jnp.maximum(z, 0.0)                                                  # (B, 128) f32

    # ---- fc2 ----
    z = jnp.dot(z.astype(jnp.bfloat16), fc2w_ref[...],
                preferred_element_type=jnp.float32) + fc2b_ref[...]
    z = jnp.maximum(z, 0.0)                                                  # (B, 64)

    # ---- fc3 (logits, lane-dense padded to 128) ----
    out = jnp.dot(z.astype(jnp.bfloat16), fc3w_ref[...],
                  preferred_element_type=jnp.float32) + fc3b_ref[...]
    out_ref[0] = out.astype(out_ref.dtype)                                   # (B, OUT_PAD)


def prepare_params(params):
    """One-time parameter prep: fold eval-mode BN scales into the downstream weights,
    reshape conv weights to stacked (K*Cin, Cout) form, split fc1 into mean/std halves,
    zero-pad fc3 to a lane-dense 128-wide output, cast matmul weights (and the biases that
    feed bf16 epilogues) to bf16."""
    s = jnp.float32(BN_SCALE)
    num_spkrs = params['fc3_w'].shape[-1]
    out_pad = max(128, ((num_spkrs + 127) // 128) * 128)
    pad = out_pad - num_spkrs

    w1 = params['w1'].reshape(K1 * C_IN, 128)
    w2 = (s * params['w2']).reshape(K2 * 128, 128)        # folds tdnn1's BN
    w3 = (s * params['w3']).reshape(128, 128)             # folds tdnn2's BN
    fc1w = s * params['fc1_w']                            # folds tdnn3's BN
    fc2w = s * params['fc2_w']                            # folds fc1's BN
    fc3w = jnp.pad(s * params['fc3_w'], ((0, 0), (0, pad)))   # folds fc2's BN
    fc3b = jnp.pad(params['fc3_b'], ((0, 0), (0, pad)))

    bf = lambda a: a.astype(jnp.bfloat16)
    return dict(
        w1=bf(w1), b1=bf(params['b1']),
        w2=bf(w2), b2=bf(params['b2']),
        w3=bf(w3), b3=params['b3'],
        fc1w_m=bf(fc1w[:128]), fc1w_s=bf(fc1w[128:]), fc1_b=params['fc1_b'],
        fc2_w=bf(fc2w), fc2_b=params['fc2_b'],
        fc3_w=bf(fc3w), fc3_b=fc3b,
        num_spkrs=num_spkrs,
    )


def _pick_batch_block(n, t2):
    """Target >= 256 matmul rows (v6e/v7x MXU height) per grid step, but keep >= 2 grid
    steps when there are >= 2 samples so both v7x TensorCores get work."""
    b_target = max(1, pl.cdiv(256, t2))
    num_blocks = max(1, pl.cdiv(n, b_target))
    if num_blocks < 2 and n >= 2:
        num_blocks = 2
    return pl.cdiv(n, num_blocks)


def simple_tdnn_forward(x_nct, prepped, eps=0.0, block_b=None):
    """x_nct: (N, 30, T) float32, PyTorch Conv1d layout. Returns (N, numSpkrs) float32."""
    del eps  # only used by the training-mode noise branch of the reference module
    x = jnp.transpose(x_nct, (0, 2, 1)).astype(jnp.float32)     # -> (N, T, 30)
    N, T, _ = x.shape
    T1 = T - D1 * (K1 - 1)
    T2 = T1 - D2 * (K2 - 1)
    assert T2 >= 2, "need T >= 14 (valid convs + unbiased std over >= 2 frames)"
    T1p = ((T1 + 7) // 8) * 8     # pad per-sample frames to a sublane tile -> aligned flat layout

    B = _pick_batch_block(N, T2) if block_b is None else max(1, min(block_b, N))
    num_blocks = pl.cdiv(N, B)
    n_pad = num_blocks * B - N
    if n_pad:
        x = jnp.pad(x, ((0, n_pad), (0, 0), (0, 0)))   # zero samples -> finite garbage, sliced away

    # Layer-1 im2col window matrix built once in the wrapper (layout plumbing for XLA),
    # time-padded to T1p and streamed to the kernel in bf16 (half the HBM->VMEM bytes).
    # TODO(synk): for long utterances, build this im2col in-kernel from the raw (T, 32) input
    # to avoid the 5x input replication in HBM.
    x_cols = jnp.concatenate([x[:, k * D1:k * D1 + T1, :] for k in range(K1)], axis=-1)
    x_cols = jnp.pad(x_cols, ((0, 0), (0, T1p - T1), (0, 0)))            # (Npad, T1p, 150)
    x_cols = x_cols.astype(jnp.bfloat16).reshape(num_blocks, B * T1p, K1 * C_IN)

    weights = [prepped['w1'], prepped['b1'], prepped['w2'], prepped['b2'],
               prepped['w3'], prepped['b3'], prepped['fc1w_m'], prepped['fc1w_s'],
               prepped['fc1_b'], prepped['fc2_w'], prepped['fc2_b'],
               prepped['fc3_w'], prepped['fc3_b']]
    out_pad = prepped['fc3_w'].shape[-1]
    num_spkrs = prepped['num_spkrs']

    def full_spec(a):
        nd = a.ndim
        # TODO(synk): pipeline_mode=pl.Buffered(1) on these grid-invariant weights would halve
        # their VMEM (skipped: support varies by JAX version and headroom is ample at ~0.4 MB).
        return pl.BlockSpec(a.shape, lambda n, _nd=nd: (0,) * _nd)  # same block every step

    kernel = functools.partial(_tdnn_kernel, B=B, T1p=T1p, T2=T2)
    out = pl.pallas_call(
        kernel,
        out_shape=jax.ShapeDtypeStruct((num_blocks, B, out_pad), jnp.float32),
        grid_spec=pltpu.PrefetchScalarGridSpec(
            num_scalar_prefetch=0,
            grid=(num_blocks,),
            in_specs=[pl.BlockSpec((1, B * T1p, K1 * C_IN), lambda n: (n, 0, 0))]
                     + [full_spec(a) for a in weights],
            out_specs=pl.BlockSpec((1, B, out_pad), lambda n: (n, 0, 0)),
            scratch_shapes=[pltpu.VMEM((B, 128), jnp.float32),   # per-sample means
                            pltpu.VMEM((B, 128), jnp.float32)],  # per-sample stds
        ),
        compiler_params=pltpu.CompilerParams(
            dimension_semantics=("parallel",),       # batch blocks sharded across TCs on v7x
            vmem_limit_bytes=32 * 1024 * 1024),      # well above the ~1 MB this config needs
    )(x_cols, *weights)
    return out.reshape(num_blocks * B, out_pad)[:N, :num_spkrs]


def init_params(key, num_spkrs):
    """Deterministic synthetic parameters.  Conv weights stored as (K, Cin, Cout),
    linear weights as (in, out), biases as (1, out)."""
    ks = jax.random.split(key, 12)

    def w(k, shape, fan_in):
        return jax.random.normal(k, shape, jnp.float32) / jnp.sqrt(jnp.float32(fan_in))

    def b(k, shape):
        return 0.01 * jax.random.normal(k, shape, jnp.float32)

    return {
        'w1': w(ks[0], (K1, 30, 128), 30 * K1),   'b1': b(ks[1], (1, 128)),
        'w2': w(ks[2], (K2, 128, 128), 128 * K2), 'b2': b(ks[3], (1, 128)),
        'w3': w(ks[4], (1, 128, 128), 128),       'b3': b(ks[5], (1, 128)),
        'fc1_w': w(ks[6], (256, 128), 256),       'fc1_b': b(ks[7], (1, 128)),
        'fc2_w': w(ks[8], (128, 64), 128),        'fc2_b': b(ks[9], (1, 64)),
        'fc3_w': w(ks[10], (64, num_spkrs), 64),  'fc3_b': b(ks[11], (1, num_spkrs)),
    }


def reference_forward(x_nct, p):
    """Pure-JAX f32 reference using lax.conv_general_dilated (independent code path,
    original un-folded parameters)."""
    def conv1d(x, w_kio, bias_1c, dilation):
        w_oik = jnp.transpose(w_kio, (2, 1, 0))                 # (Cout, Cin, K)
        y = jax.lax.conv_general_dilated(
            x, w_oik, window_strides=(1,), padding='VALID',
            rhs_dilation=(dilation,), dimension_numbers=('NCH', 'OIH', 'NCH'))
        return y + bias_1c.reshape(1, -1, 1)

    h = jnp.maximum(conv1d(x_nct, p['w1'], p['b1'], 1), 0.0) * BN_SCALE
    h = jnp.maximum(conv1d(h, p['w2'], p['b2'], 2), 0.0) * BN_SCALE
    h = jnp.maximum(conv1d(h, p['w3'], p['b3'], 1), 0.0) * BN_SCALE
    stats = jnp.concatenate([h.mean(axis=2), jnp.std(h, axis=2, ddof=1)], axis=1)
    z = jnp.maximum(stats @ p['fc1_w'] + p['fc1_b'], 0.0) * BN_SCALE
    z = jnp.maximum(z @ p['fc2_w'] + p['fc2_b'], 0.0) * BN_SCALE
    return z @ p['fc3_w'] + p['fc3_b']


if __name__ == "__main__":
    key = jax.random.PRNGKey(0)
    kx, kp = jax.random.split(key)

    # T=32 -> 28 frames after tdnn1 -> 20 after tdnn2/3. N=16 -> B=8, grid=(2,):
    # conv matmuls see 256 rows per step and both v7x TensorCores get a block.
    N, T, NUM_SPKRS = 16, 32, 8
    x = jax.random.normal(kx, (N, C_IN, T), jnp.float32)        # PyTorch NCT input
    params = init_params(kp, NUM_SPKRS)
    prepped = prepare_params(params)

    out = simple_tdnn_forward(x, prepped, eps=1e-5)
    out = jax.block_until_ready(out)
    assert out.shape == (N, NUM_SPKRS)

    ref = reference_forward(x, params)
    # bf16 matmul operands / epilogues (f32 accumulation) -> loosened tolerance vs pure-f32 ref.
    assert jnp.allclose(out, ref, rtol=3e-2, atol=3e-2), "Pallas kernel mismatch vs JAX reference"

    print("KERNEL_OK")
</pallas_src>

<mosaic_0001>
module attributes {stable_mosaic.version = 11 : i64} {
  func.func @_tdnn_kernel(%arg0: i32, %arg1: memref<1x256x150xbf16, #tpu.memory_space<vmem>>, %arg2: memref<150x128xbf16, #tpu.memory_space<vmem>>, %arg3: memref<1x128xbf16, #tpu.memory_space<vmem>>, %arg4: memref<640x128xbf16, #tpu.memory_space<vmem>>, %arg5: memref<1x128xbf16, #tpu.memory_space<vmem>>, %arg6: memref<128x128xbf16, #tpu.memory_space<vmem>>, %arg7: memref<1x128xf32, #tpu.memory_space<vmem>>, %arg8: memref<128x128xbf16, #tpu.memory_space<vmem>>, %arg9: memref<128x128xbf16, #tpu.memory_space<vmem>>, %arg10: memref<1x128xf32, #tpu.memory_space<vmem>>, %arg11: memref<128x64xbf16, #tpu.memory_space<vmem>>, %arg12: memref<1x64xf32, #tpu.memory_space<vmem>>, %arg13: memref<64x128xbf16, #tpu.memory_space<vmem>>, %arg14: memref<1x128xf32, #tpu.memory_space<vmem>>, %arg15: memref<1x8x128xf32, #tpu.memory_space<vmem>>, %arg16: memref<8x128xf32, #tpu.memory_space<vmem>>, %arg17: memref<8x128xf32, #tpu.memory_space<vmem>>) attributes {dimension_semantics = [#tpu.dimension_semantics<parallel>], iteration_bounds = array<i64: 2>, scalar_prefetch = 0 : i64, scratch_operands = 2 : i64, tpu.core_type = #tpu.core_type<tc>, window_params = [{transform_indices = @transform_0, window_bounds = array<i64: 1, 256, 150>}, {pipeline_mode = #tpu.pipeline_mode<synchronous>, transform_indices = @transform_1, window_bounds = array<i64: 150, 128>}, {pipeline_mode = #tpu.pipeline_mode<synchronous>, transform_indices = @transform_2, window_bounds = array<i64: 1, 128>}, {pipeline_mode = #tpu.pipeline_mode<synchronous>, transform_indices = @transform_3, window_bounds = array<i64: 640, 128>}, {pipeline_mode = #tpu.pipeline_mode<synchronous>, transform_indices = @transform_4, window_bounds = array<i64: 1, 128>}, {pipeline_mode = #tpu.pipeline_mode<synchronous>, transform_indices = @transform_5, window_bounds = array<i64: 128, 128>}, {pipeline_mode = #tpu.pipeline_mode<synchronous>, transform_indices = @transform_6, window_bounds = array<i64: 1, 128>}, {pipeline_mode = #tpu.pipeline_mode<synchronous>, transform_indices = @transform_7, window_bounds = array<i64: 128, 128>}, {pipeline_mode = #tpu.pipeline_mode<synchronous>, transform_indices = @transform_8, window_bounds = array<i64: 128, 128>}, {pipeline_mode = #tpu.pipeline_mode<synchronous>, transform_indices = @transform_9, window_bounds = array<i64: 1, 128>}, {pipeline_mode = #tpu.pipeline_mode<synchronous>, transform_indices = @transform_10, window_bounds = array<i64: 128, 64>}, {pipeline_mode = #tpu.pipeline_mode<synchronous>, transform_indices = @transform_11, window_bounds = array<i64: 1, 64>}, {pipeline_mode = #tpu.pipeline_mode<synchronous>, transform_indices = @transform_12, window_bounds = array<i64: 64, 128>}, {pipeline_mode = #tpu.pipeline_mode<synchronous>, transform_indices = @transform_13, window_bounds = array<i64: 1, 128>}, {transform_indices = @transform_14, window_bounds = array<i64: 1, 8, 128>}]} {
    %c0 = arith.constant 0 : index
    %c0_0 = arith.constant 0 : index
    %c0_1 = arith.constant 0 : index
    %0 = vector.load %arg1[%c0, %c0_0, %c0_1] : memref<1x256x150xbf16, #tpu.memory_space<vmem>>, vector<1x256x150xbf16>
    %1 = vector.shape_cast %0 : vector<1x256x150xbf16> to vector<256x150xbf16>
    %c0_2 = arith.constant 0 : index
    %c0_3 = arith.constant 0 : index
    %2 = vector.load %arg2[%c0_2, %c0_3] : memref<150x128xbf16, #tpu.memory_space<vmem>>, vector<150x128xbf16>
    %cst = arith.constant dense<0.000000e+00> : vector<256x128xf32>
    %3 = tpu.matmul %1, %2, %cst {dimension_numbers = #tpu.dot_dimension_numbers<[1], [0], [0], [1], [0, 0, 1, 1], [], []>} : vector<256x150xbf16>, vector<150x128xbf16>, vector<256x128xf32> -> vector<256x128xf32>
    %4 = arith.truncf %3 : vector<256x128xf32> to vector<256x128xbf16>
    %c0_4 = arith.constant 0 : index
    %c0_5 = arith.constant 0 : index
    %5 = vector.load %arg3[%c0_4, %c0_5] : memref<1x128xbf16, #tpu.memory_space<vmem>>, vector<1x128xbf16>
    %6 = vector.broadcast %5 : vector<1x128xbf16> to vector<256x128xbf16>
    %7 = arith.addf %4, %6 : vector<256x128xbf16>
    %cst_6 = arith.constant 0.000000e+00 : bf16
    %8 = vector.broadcast %cst_6 : bf16 to vector<256x128xbf16>
    %9 = arith.maximumf %7, %8 : vector<256x128xbf16>
    %10 = vector.extract_strided_slice %9 {offsets = [0, 0], sizes = [248, 128], strides = [1, 1]} : vector<256x128xbf16> to vector<248x128xbf16>
    %11 = vector.extract_strided_slice %9 {offsets = [2, 0], sizes = [248, 128], strides = [1, 1]} : vector<256x128xbf16> to vector<248x128xbf16>
    %12 = vector.extract_strided_slice %9 {offsets = [4, 0], sizes = [248, 128], strides = [1, 1]} : vector<256x128xbf16> to vector<248x128xbf16>
    %13 = vector.extract_strided_slice %9 {offsets = [6, 0], sizes = [248, 128], strides = [1, 1]} : vector<256x128xbf16> to vector<248x128xbf16>
    %14 = vector.extract_strided_slice %9 {offsets = [8, 0], sizes = [248, 128], strides = [1, 1]} : vector<256x128xbf16> to vector<248x128xbf16>
    %15 = tpu.concatenate %10, %11, %12, %13, %14 in 1 : vector<248x128xbf16>, vector<248x128xbf16>, vector<248x128xbf16>, vector<248x128xbf16>, vector<248x128xbf16> -> vector<248x640xbf16>
    %c0_7 = arith.constant 0 : index
    %c0_8 = arith.constant 0 : index
    %16 = vector.load %arg4[%c0_7, %c0_8] : memref<640x128xbf16, #tpu.memory_space<vmem>>, vector<640x128xbf16>
    %cst_9 = arith.constant dense<0.000000e+00> : vector<248x128xf32>
    %17 = tpu.matmul %15, %16, %cst_9 {dimension_numbers = #tpu.dot_dimension_numbers<[1], [0], [0], [1], [0, 0, 1, 1], [], []>} : vector<248x640xbf16>, vector<640x128xbf16>, vector<248x128xf32> -> vector<248x128xf32>
    %18 = arith.truncf %17 : vector<248x128xf32> to vector<248x128xbf16>
    %c0_10 = arith.constant 0 : index
    %c0_11 = arith.constant 0 : index
    %19 = vector.load %arg5[%c0_10, %c0_11] : memref<1x128xbf16, #tpu.memory_space<vmem>>, vector<1x128xbf16>
    %20 = vector.broadcast %19 : vector<1x128xbf16> to vector<248x128xbf16>
    %21 = arith.addf %18, %20 : vector<248x128xbf16>
    %cst_12 = arith.constant 0.000000e+00 : bf16
    %22 = vector.broadcast %cst_12 : bf16 to vector<248x128xbf16>
    %23 = arith.maximumf %21, %22 : vector<248x128xbf16>
    %c0_13 = arith.constant 0 : index
    %c0_14 = arith.constant 0 : index
    %24 = vector.load %arg6[%c0_13, %c0_14] : memref<128x128xbf16, #tpu.memory_space<vmem>>, vector<128x128xbf16>
    %cst_15 = arith.constant dense<0.000000e+00> : vector<248x128xf32>
    %25 = tpu.matmul %23, %24, %cst_15 {dimension_numbers = #tpu.dot_dimension_numbers<[1], [0], [0], [1], [0, 0, 1, 1], [], []>} : vector<248x128xbf16>, vector<128x128xbf16>, vector<248x128xf32> -> vector<248x128xf32>
    %c0_16 = arith.constant 0 : index
    %c0_17 = arith.constant 0 : index
    %26 = vector.load %arg7[%c0_16, %c0_17] : memref<1x128xf32, #tpu.memory_space<vmem>>, vector<1x128xf32>
    %27 = vector.broadcast %26 : vector<1x128xf32> to vector<248x128xf32>
    %28 = arith.addf %25, %27 : vector<248x128xf32>
    %cst_18 = arith.constant 0.000000e+00 : f32
    %29 = vector.broadcast %cst_18 : f32 to vector<248x128xf32>
    %30 = arith.maximumf %28, %29 : vector<248x128xf32>
    %31 = vector.extract_strided_slice %30 {offsets = [0, 0], sizes = [20, 128], strides = [1, 1]} : vector<248x128xf32> to vector<20x128xf32>
    %cst_19 = arith.constant dense<0.000000e+00> : vector<128xf32>
    %32 = vector.multi_reduction <add>, %31, %cst_19 [0] : vector<20x128xf32> to vector<128xf32>
    %33 = vector.shape_cast %32 : vector<128xf32> to vector<1x128xf32>
    %cst_20 = arith.constant 5.000000e-02 : f32
    %34 = vector.broadcast %cst_20 : f32 to vector<1x128xf32>
    %35 = arith.mulf %33, %34 : vector<1x128xf32>
    %36 = vector.broadcast %35 : vector<1x128xf32> to vector<20x128xf32>
    %37 = arith.subf %31, %36 : vector<20x128xf32>
    %38 = arith.mulf %37, %37 : vector<20x128xf32>
    %cst_21 = arith.constant dense<0.000000e+00> : vector<128xf32>
    %39 = vector.multi_reduction <add>, %38, %cst_21 [0] : vector<20x128xf32> to vector<128xf32>
    %40 = vector.shape_cast %39 : vector<128xf32> to vector<1x128xf32>
    %cst_22 = arith.constant 0.0526315793 : f32
    %41 = vector.broadcast %cst_22 : f32 to vector<1x128xf32>
    %42 = arith.mulf %40, %41 : vector<1x128xf32>
    %c0_23 = arith.constant 0 : index
    %c0_24 = arith.constant 0 : index
    %43 = vector.load %arg16[%c0_23, %c0_24] : memref<8x128xf32, #tpu.memory_space<vmem>>, vector<1x128xf32>
    tpu.vector_store %arg16[%c0_23, %c0_24], %35 {strides = array<i32>} : memref<8x128xf32, #tpu.memory_space<vmem>>, vector<1x128xf32>,
    %44 = math.sqrt %42 : vector<1x128xf32>
    %c0_25 = arith.constant 0 : index
    %c0_26 = arith.constant 0 : index
    %45 = vector.load %arg17[%c0_25, %c0_26] : memref<8x128xf32, #tpu.memory_space<vmem>>, vector<1x128xf32>
    tpu.vector_store %arg17[%c0_25, %c0_26], %44 {strides = array<i32>} : memref<8x128xf32, #tpu.memory_space<vmem>>, vector<1x128xf32>,
    %46 = vector.extract_strided_slice %30 {offsets = [32, 0], sizes = [20, 128], strides = [1, 1]} : vector<248x128xf32> to vector<20x128xf32>
    %cst_27 = arith.constant dense<0.000000e+00> : vector<128xf32>
    %47 = vector.multi_reduction <add>, %46, %cst_27 [0] : vector<20x128xf32> to vector<128xf32>
    %48 = vector.shape_cast %47 : vector<128xf32> to vector<1x128xf32>
    %cst_28 = arith.constant 5.000000e-02 : f32
    %49 = vector.broadcast %cst_28 : f32 to vector<1x128xf32>
    %50 = arith.mulf %48, %49 : vector<1x128xf32>
    %51 = vector.broadcast %50 : vector<1x128xf32> to vector<20x128xf32>
    %52 = arith.subf %46, %51 : vector<20x128xf32>
    %53 = arith.mulf %52, %52 : vector<20x128xf32>
    %cst_29 = arith.constant dense<0.000000e+00> : vector<128xf32>
    %54 = vector.multi_reduction <add>, %53, %cst_29 [0] : vector<20x128xf32> to vector<128xf32>
    %55 = vector.shape_cast %54 : vector<128xf32> to vector<1x128xf32>
    %cst_30 = arith.constant 0.0526315793 : f32
    %56 = vector.broadcast %cst_30 : f32 to vector<1x128xf32>
    %57 = arith.mulf %55, %56 : vector<1x128xf32>
    %c1 = arith.constant 1 : index
    %c0_31 = arith.constant 0 : index
    %58 = vector.load %arg16[%c1, %c0_31] : memref<8x128xf32, #tpu.memory_space<vmem>>, vector<1x128xf32>
    tpu.vector_store %arg16[%c1, %c0_31], %50 {strides = array<i32>} : memref<8x128xf32, #tpu.memory_space<vmem>>, vector<1x128xf32>,
    %59 = math.sqrt %57 : vector<1x128xf32>
    %c1_32 = arith.constant 1 : index
    %c0_33 = arith.constant 0 : index
    %60 = vector.load %arg17[%c1_32, %c0_33] : memref<8x128xf32, #tpu.memory_space<vmem>>, vector<1x128xf32>
    tpu.vector_store %arg17[%c1_32, %c0_33], %59 {strides = array<i32>} : memref<8x128xf32, #tpu.memory_space<vmem>>, vector<1x128xf32>,
    %61 = vector.extract_strided_slice %30 {offsets = [64, 0], sizes = [20, 128], strides = [1, 1]} : vector<248x128xf32> to vector<20x128xf32>
    %cst_34 = arith.constant dense<0.000000e+00> : vector<128xf32>
    %62 = vector.multi_reduction <add>, %61, %cst_34 [0] : vector<20x128xf32> to vector<128xf32>
    %63 = vector.shape_cast %62 : vector<128xf32> to vector<1x128xf32>
    %cst_35 = arith.constant 5.000000e-02 : f32
    %64 = vector.broadcast %cst_35 : f32 to vector<1x128xf32>
    %65 = arith.mulf %63, %64 : vector<1x128xf32>
    %66 = vector.broadcast %65 : vector<1x128xf32> to vector<20x128xf32>
    %67 = arith.subf %61, %66 : vector<20x128xf32>
    %68 = arith.mulf %67, %67 : vector<20x128xf32>
    %cst_36 = arith.constant dense<0.000000e+00> : vector<128xf32>
    %69 = vector.multi_reduction <add>, %68, %cst_36 [0] : vector<20x128xf32> to vector<128xf32>
    %70 = vector.shape_cast %69 : vector<128xf32> to vector<1x128xf32>
    %cst_37 = arith.constant 0.0526315793 : f32
    %71 = vector.broadcast %cst_37 : f32 to vector<1x128xf32>
    %72 = arith.mulf %70, %71 : vector<1x128xf32>
    %c2 = arith.constant 2 : index
    %c0_38 = arith.constant 0 : index
    %73 = vector.load %arg16[%c2, %c0_38] : memref<8x128xf32, #tpu.memory_space<vmem>>, vector<1x128xf32>
    tpu.vector_store %arg16[%c2, %c0_38], %65 {strides = array<i32>} : memref<8x128xf32, #tpu.memory_space<vmem>>, vector<1x128xf32>,
    %74 = math.sqrt %72 : vector<1x128xf32>
    %c2_39 = arith.constant 2 : index
    %c0_40 = arith.constant 0 : index
    %75 = vector.load %arg17[%c2_39, %c0_40] : memref<8x128xf32, #tpu.memory_space<vmem>>, vector<1x128xf32>
    tpu.vector_store %arg17[%c2_39, %c0_40], %74 {strides = array<i32>} : memref<8x128xf32, #tpu.memory_space<vmem>>, vector<1x128xf32>,
    %76 = vector.extract_strided_slice %30 {offsets = [96, 0], sizes = [20, 128], strides = [1, 1]} : vector<248x128xf32> to vector<20x128xf32>
    %cst_41 = arith.constant dense<0.000000e+00> : vector<128xf32>
    %77 = vector.multi_reduction <add>, %76, %cst_41 [0] : vector<20x128xf32> to vector<128xf32>
    %78 = vector.shape_cast %77 : vector<128xf32> to vector<1x128xf32>
    %cst_42 = arith.constant 5.000000e-02 : f32
    %79 = vector.broadcast %cst_42 : f32 to vector<1x128xf32>
    %80 = arith.mulf %78, %79 : vector<1x128xf32>
    %81 = vector.broadcast %80 : vector<1x128xf32> to vector<20x128xf32>
    %82 = arith.subf %76, %81 : vector<20x128xf32>
    %83 = arith.mulf %82, %82 : vector<20x128xf32>
    %cst_43 = arith.constant dense<0.000000e+00> : vector<128xf32>
    %84 = vector.multi_reduction <add>, %83, %cst_43 [0] : vector<20x128xf32> to vector<128xf32>
    %85 = vector.shape_cast %84 : vector<128xf32> to vector<1x128xf32>
    %cst_44 = arith.constant 0.0526315793 : f32
    %86 = vector.broadcast %cst_44 : f32 to vector<1x128xf32>
    %87 = arith.mulf %85, %86 : vector<1x128xf32>
    %c3 = arith.constant 3 : index
    %c0_45 = arith.constant 0 : index
    %88 = vector.load %arg16[%c3, %c0_45] : memref<8x128xf32, #tpu.memory_space<vmem>>, vector<1x128xf32>
    tpu.vector_store %arg16[%c3, %c0_45], %80 {strides = array<i32>} : memref<8x128xf32, #tpu.memory_space<vmem>>, vector<1x128xf32>,
    %89 = math.sqrt %87 : vector<1x128xf32>
    %c3_46 = arith.constant 3 : index
    %c0_47 = arith.constant 0 : index
    %90 = vector.load %arg17[%c3_46, %c0_47] : memref<8x128xf32, #tpu.memory_space<vmem>>, vector<1x128xf32>
    tpu.vector_store %arg17[%c3_46, %c0_47], %89 {strides = array<i32>} : memref<8x128xf32, #tpu.memory_space<vmem>>, vector<1x128xf32>,
    %91 = vector.extract_strided_slice %30 {offsets = [128, 0], sizes = [20, 128], strides = [1, 1]} : vector<248x128xf32> to vector<20x128xf32>
    %cst_48 = arith.constant dense<0.000000e+00> : vector<128xf32>
    %92 = vector.multi_reduction <add>, %91, %cst_48 [0] : vector<20x128xf32> to vector<128xf32>
    %93 = vector.shape_cast %92 : vector<128xf32> to vector<1x128xf32>
    %cst_49 = arith.constant 5.000000e-02 : f32
    %94 = vector.broadcast %cst_49 : f32 to vector<1x128xf32>
    %95 = arith.mulf %93, %94 : vector<1x128xf32>
    %96 = vector.broadcast %95 : vector<1x128xf32> to vector<20x128xf32>
    %97 = arith.subf %91, %96 : vector<20x128xf32>
    %98 = arith.mulf %97, %97 : vector<20x128xf32>
    %cst_50 = arith.constant dense<0.000000e+00> : vector<128xf32>
    %99 = vector.multi_reduction <add>, %98, %cst_50 [0] : vector<20x128xf32> to vector<128xf32>
    %100 = vector.shape_cast %99 : vector<128xf32> to vector<1x128xf32>
    %cst_51 = arith.constant 0.0526315793 : f32
    %101 = vector.broadcast %cst_51 : f32 to vector<1x128xf32>
    %102 = arith.mulf %100, %101 : vector<1x128xf32>
    %c4 = arith.constant 4 : index
    %c0_52 = arith.constant 0 : index
    %103 = vector.load %arg16[%c4, %c0_52] : memref<8x128xf32, #tpu.memory_space<vmem>>, vector<1x128xf32>
    tpu.vector_store %arg16[%c4, %c0_52], %95 {strides = array<i32>} : memref<8x128xf32, #tpu.memory_space<vmem>>, vector<1x128xf32>,
    %104 = math.sqrt %102 : vector<1x128xf32>
    %c4_53 = arith.constant 4 : index
    %c0_54 = arith.constant 0 : index
    %105 = vector.load %arg17[%c4_53, %c0_54] : memref<8x128xf32, #tpu.memory_space<vmem>>, vector<1x128xf32>
    tpu.vector_store %arg17[%c4_53, %c0_54], %104 {strides = array<i32>} : memref<8x128xf32, #tpu.memory_space<vmem>>, vector<1x128xf32>,
    %106 = vector.extract_strided_slice %30 {offsets = [160, 0], sizes = [20, 128], strides = [1, 1]} : vector<248x128xf32> to vector<20x128xf32>
    %cst_55 = arith.constant dense<0.000000e+00> : vector<128xf32>
    %107 = vector.multi_reduction <add>, %106, %cst_55 [0] : vector<20x128xf32> to vector<128xf32>
    %108 = vector.shape_cast %107 : vector<128xf32> to vector<1x128xf32>
    %cst_56 = arith.constant 5.000000e-02 : f32
    %109 = vector.broadcast %cst_56 : f32 to vector<1x128xf32>
    %110 = arith.mulf %108, %109 : vector<1x128xf32>
    %111 = vector.broadcast %110 : vector<1x128xf32> to vector<20x128xf32>
    %112 = arith.subf %106, %111 : vector<20x128xf32>
    %113 = arith.mulf %112, %112 : vector<20x128xf32>
    %cst_57 = arith.constant dense<0.000000e+00> : vector<128xf32>
    %114 = vector.multi_reduction <add>, %113, %cst_57 [0] : vector<20x128xf32> to vector<128xf32>
    %115 = vector.shape_cast %114 : vector<128xf32> to vector<1x128xf32>
    %cst_58 = arith.constant 0.0526315793 : f32
    %116 = vector.broadcast %cst_58 : f32 to vector<1x128xf32>
    %117 = arith.mulf %115, %116 : vector<1x128xf32>
    %c5 = arith.constant 5 : index
    %c0_59 = arith.constant 0 : index
    %118 = vector.load %arg16[%c5, %c0_59] : memref<8x128xf32, #tpu.memory_space<vmem>>, vector<1x128xf32>
    tpu.vector_store %arg16[%c5, %c0_59], %110 {strides = array<i32>} : memref<8x128xf32, #tpu.memory_space<vmem>>, vector<1x128xf32>,
    %119 = math.sqrt %117 : vector<1x128xf32>
    %c5_60 = arith.constant 5 : index
    %c0_61 = arith.constant 0 : index
    %120 = vector.load %arg17[%c5_60, %c0_61] : memref<8x128xf32, #tpu.memory_space<vmem>>, vector<1x128xf32>
    tpu.vector_store %arg17[%c5_60, %c0_61], %119 {strides = array<i32>} : memref<8x128xf32, #tpu.memory_space<vmem>>, vector<1x128xf32>,
    %121 = vector.extract_strided_slice %30 {offsets = [192, 0], sizes = [20, 128], strides = [1, 1]} : vector<248x128xf32> to vector<20x128xf32>
    %cst_62 = arith.constant dense<0.000000e+00> : vector<128xf32>
    %122 = vector.multi_reduction <add>, %121, %cst_62 [0] : vector<20x128xf32> to vector<128xf32>
    %123 = vector.shape_cast %122 : vector<128xf32> to vector<1x128xf32>
    %cst_63 = arith.constant 5.000000e-02 : f32
    %124 = vector.broadcast %cst_63 : f32 to vector<1x128xf32>
    %125 = arith.mulf %123, %124 : vector<1x128xf32>
    %126 = vector.broadcast %125 : vector<1x128xf32> to vector<20x128xf32>
    %127 = arith.subf %121, %126 : vector<20x128xf32>
    %128 = arith.mulf %127, %127 : vector<20x128xf32>
    %cst_64 = arith.constant dense<0.000000e+00> : vector<128xf32>
    %129 = vector.multi_reduction <add>, %128, %cst_64 [0] : vector<20x128xf32> to vector<128xf32>
    %130 = vector.shape_cast %129 : vector<128xf32> to vector<1x128xf32>
    %cst_65 = arith.constant 0.0526315793 : f32
    %131 = vector.broadcast %cst_65 : f32 to vector<1x128xf32>
    %132 = arith.mulf %130, %131 : vector<1x128xf32>
    %c6 = arith.constant 6 : index
    %c0_66 = arith.constant 0 : index
    %133 = vector.load %arg16[%c6, %c0_66] : memref<8x128xf32, #tpu.memory_space<vmem>>, vector<1x128xf32>
    tpu.vector_store %arg16[%c6, %c0_66], %125 {strides = array<i32>} : memref<8x128xf32, #tpu.memory_space<vmem>>, vector<1x128xf32>,
    %134 = math.sqrt %132 : vector<1x128xf32>
    %c6_67 = arith.constant 6 : index
    %c0_68 = arith.constant 0 : index
    %135 = vector.load %arg17[%c6_67, %c0_68] : memref<8x128xf32, #tpu.memory_space<vmem>>, vector<1x128xf32>
    tpu.vector_store %arg17[%c6_67, %c0_68], %134 {strides = array<i32>} : memref<8x128xf32, #tpu.memory_space<vmem>>, vector<1x128xf32>,
    %136 = vector.extract_strided_slice %30 {offsets = [224, 0], sizes = [20, 128], strides = [1, 1]} : vector<248x128xf32> to vector<20x128xf32>
    %cst_69 = arith.constant dense<0.000000e+00> : vector<128xf32>
    %137 = vector.multi_reduction <add>, %136, %cst_69 [0] : vector<20x128xf32> to vector<128xf32>
    %138 = vector.shape_cast %137 : vector<128xf32> to vector<1x128xf32>
    %cst_70 = arith.constant 5.000000e-02 : f32
    %139 = vector.broadcast %cst_70 : f32 to vector<1x128xf32>
    %140 = arith.mulf %138, %139 : vector<1x128xf32>
    %141 = vector.broadcast %140 : vector<1x128xf32> to vector<20x128xf32>
    %142 = arith.subf %136, %141 : vector<20x128xf32>
    %143 = arith.mulf %142, %142 : vector<20x128xf32>
    %cst_71 = arith.constant dense<0.000000e+00> : vector<128xf32>
    %144 = vector.multi_reduction <add>, %143, %cst_71 [0] : vector<20x128xf32> to vector<128xf32>
    %145 = vector.shape_cast %144 : vector<128xf32> to vector<1x128xf32>
    %cst_72 = arith.constant 0.0526315793 : f32
    %146 = vector.broadcast %cst_72 : f32 to vector<1x128xf32>
    %147 = arith.mulf %145, %146 : vector<1x128xf32>
    %c7 = arith.constant 7 : index
    %c0_73 = arith.constant 0 : index
    %148 = vector.load %arg16[%c7, %c0_73] : memref<8x128xf32, #tpu.memory_space<vmem>>, vector<1x128xf32>
    tpu.vector_store %arg16[%c7, %c0_73], %140 {strides = array<i32>} : memref<8x128xf32, #tpu.memory_space<vmem>>, vector<1x128xf32>,
    %149 = math.sqrt %147 : vector<1x128xf32>
    %c7_74 = arith.constant 7 : index
    %c0_75 = arith.constant 0 : index
    %150 = vector.load %arg17[%c7_74, %c0_75] : memref<8x128xf32, #tpu.memory_space<vmem>>, vector<1x128xf32>
    tpu.vector_store %arg17[%c7_74, %c0_75], %149 {strides = array<i32>} : memref<8x128xf32, #tpu.memory_space<vmem>>, vector<1x128xf32>,
    %c0_76 = arith.constant 0 : index
    %c0_77 = arith.constant 0 : index
    %151 = vector.load %arg16[%c0_76, %c0_77] : memref<8x128xf32, #tpu.memory_space<vmem>>, vector<8x128xf32>
    %152 = arith.truncf %151 : vector<8x128xf32> to vector<8x128xbf16>
    %c0_78 = arith.constant 0 : index
    %c0_79 = arith.constant 0 : index
    %153 = vector.load %arg17[%c0_78, %c0_79] : memref<8x128xf32, #tpu.memory_space<vmem>>, vector<8x128xf32>
    %154 = arith.truncf %153 : vector<8x128xf32> to vector<8x128xbf16>
    %c0_80 = arith.constant 0 : index
    %c0_81 = arith.constant 0 : index
    %155 = vector.load %arg8[%c0_80, %c0_81] : memref<128x128xbf16, #tpu.memory_space<vmem>>, vector<128x128xbf16>
    %cst_82 = arith.constant dense<0.000000e+00> : vector<8x128xf32>
    %156 = tpu.matmul %152, %155, %cst_82 {dimension_numbers = #tpu.dot_dimension_numbers<[1], [0], [0], [1], [0, 0, 1, 1], [], []>} : vector<8x128xbf16>, vector<128x128xbf16>, vector<8x128xf32> -> vector<8x128xf32>
    %c0_83 = arith.constant 0 : index
    %c0_84 = arith.constant 0 : index
    %157 = vector.load %arg9[%c0_83, %c0_84] : memref<128x128xbf16, #tpu.memory_space<vmem>>, vector<128x128xbf16>
    %cst_85 = arith.constant dense<0.000000e+00> : vector<8x128xf32>
    %158 = tpu.matmul %154, %157, %cst_85 {dimension_numbers = #tpu.dot_dimension_numbers<[1], [0], [0], [1], [0, 0, 1, 1], [], []>} : vector<8x128xbf16>, vector<128x128xbf16>, vector<8x128xf32> -> vector<8x128xf32>
    %159 = arith.addf %156, %158 : vector<8x128xf32>
    %c0_86 = arith.constant 0 : index
    %c0_87 = arith.constant 0 : index
    %160 = vector.load %arg10[%c0_86, %c0_87] : memref<1x128xf32, #tpu.memory_space<vmem>>, vector<1x128xf32>
    %161 = vector.broadcast %160 : vector<1x128xf32> to vector<8x128xf32>
    %162 = arith.addf %159, %161 : vector<8x128xf32>
    %cst_88 = arith.constant 0.000000e+00 : f32
    %163 = vector.broadcast %cst_88 : f32 to vector<8x128xf32>
    %164 = arith.maximumf %162, %163 : vector<8x128xf32>
    %165 = arith.truncf %164 : vector<8x128xf32> to vector<8x128xbf16>
    %c0_89 = arith.constant 0 : index
    %c0_90 = arith.constant 0 : index
    %166 = vector.load %arg11[%c0_89, %c0_90] : memref<128x64xbf16, #tpu.memory_space<vmem>>, vector<128x64xbf16>
    %cst_91 = arith.constant dense<0.000000e+00> : vector<8x64xf32>
    %167 = tpu.matmul %165, %166, %cst_91 {dimension_numbers = #tpu.dot_dimension_numbers<[1], [0], [0], [1], [0, 0, 1, 1], [], []>} : vector<8x128xbf16>, vector<128x64xbf16>, vector<8x64xf32> -> vector<8x64xf32>
    %c0_92 = arith.constant 0 : index
    %c0_93 = arith.constant 0 : index
    %168 = vector.load %arg12[%c0_92, %c0_93] : memref<1x64xf32, #tpu.memory_space<vmem>>, vector<1x64xf32>
    %169 = vector.broadcast %168 : vector<1x64xf32> to vector<8x64xf32>
    %170 = arith.addf %167, %169 : vector<8x64xf32>
    %cst_94 = arith.constant 0.000000e+00 : f32
    %171 = vector.broadcast %cst_94 : f32 to vector<8x64xf32>
    %172 = arith.maximumf %170, %171 : vector<8x64xf32>
    %173 = arith.truncf %172 : vector<8x64xf32> to vector<8x64xbf16>
    %c0_95 = arith.constant 0 : index
    %c0_96 = arith.constant 0 : index
    %174 = vector.load %arg13[%c0_95, %c0_96] : memref<64x128xbf16, #tpu.memory_space<vmem>>, vector<64x128xbf16>
    %cst_97 = arith.constant dense<0.000000e+00> : vector<8x128xf32>
    %175 = tpu.matmul %173, %174, %cst_97 {dimension_numbers = #tpu.dot_dimension_numbers<[1], [0], [0], [1], [0, 0, 1, 1], [], []>} : vector<8x64xbf16>, vector<64x128xbf16>, vector<8x128xf32> -> vector<8x128xf32>
    %c0_98 = arith.constant 0 : index
    %c0_99 = arith.constant 0 : index
    %176 = vector.load %arg14[%c0_98, %c0_99] : memref<1x128xf32, #tpu.memory_space<vmem>>, vector<1x128xf32>
    %177 = vector.broadcast %176 : vector<1x128xf32> to vector<8x128xf32>
    %178 = arith.addf %175, %177 : vector<8x128xf32>
    %c0_100 = arith.constant 0 : index
    %c0_101 = arith.constant 0 : index
    %c0_102 = arith.constant 0 : index
    %179 = vector.load %arg15[%c0_100, %c0_101, %c0_102] : memref<1x8x128xf32, #tpu.memory_space<vmem>>, vector<1x8x128xf32>
    %180 = vector.shape_cast %179 : vector<1x8x128xf32> to vector<8x128xf32>
    %181 = vector.shape_cast %178 : vector<8x128xf32> to vector<1x8x128xf32>
    tpu.vector_store %arg15[%c0_100, %c0_101, %c0_102], %181 {strides = array<i32>} : memref<1x8x128xf32, #tpu.memory_space<vmem>>, vector<1x8x128xf32>,
    return
  }
  func.func @transform_0(%arg0: i32) -> (i32, i32, i32) {
    %c0_i32 = arith.constant 0 : i32
    %c0_i32_0 = arith.constant 0 : i32
    %c0_i32_1 = arith.constant 0 : i32
    return %arg0, %c0_i32, %c0_i32_0 : i32, i32, i32
  }
  func.func @transform_1(%arg0: i32) -> (i32, i32) {
    %c0_i32 = arith.constant 0 : i32
    %c0_i32_0 = arith.constant 0 : i32
    %c0_i32_1 = arith.constant 0 : i32
    return %c0_i32, %c0_i32_0 : i32, i32
  }
  func.func @transform_2(%arg0: i32) -> (i32, i32) {
    %c0_i32 = arith.constant 0 : i32
    %c0_i32_0 = arith.constant 0 : i32
    %c0_i32_1 = arith.constant 0 : i32
    return %c0_i32, %c0_i32_0 : i32, i32
  }
  func.func @transform_3(%arg0: i32) -> (i32, i32) {
    %c0_i32 = arith.constant 0 : i32
    %c0_i32_0 = arith.constant 0 : i32
    %c0_i32_1 = arith.constant 0 : i32
    return %c0_i32, %c0_i32_0 : i32, i32
  }
  func.func @transform_4(%arg0: i32) -> (i32, i32) {
    %c0_i32 = arith.constant 0 : i32
    %c0_i32_0 = arith.constant 0 : i32
    %c0_i32_1 = arith.constant 0 : i32
    return %c0_i32, %c0_i32_0 : i32, i32
  }
  func.func @transform_5(%arg0: i32) -> (i32, i32) {
    %c0_i32 = arith.constant 0 : i32
    %c0_i32_0 = arith.constant 0 : i32
    %c0_i32_1 = arith.constant 0 : i32
    return %c0_i32, %c0_i32_0 : i32, i32
  }
  func.func @transform_6(%arg0: i32) -> (i32, i32) {
    %c0_i32 = arith.constant 0 : i32
    %c0_i32_0 = arith.constant 0 : i32
    %c0_i32_1 = arith.constant 0 : i32
    return %c0_i32, %c0_i32_0 : i32, i32
  }
  func.func @transform_7(%arg0: i32) -> (i32, i32) {
    %c0_i32 = arith.constant 0 : i32
    %c0_i32_0 = arith.constant 0 : i32
    %c0_i32_1 = arith.constant 0 : i32
    return %c0_i32, %c0_i32_0 : i32, i32
  }
  func.func @transform_8(%arg0: i32) -> (i32, i32) {
    %c0_i32 = arith.constant 0 : i32
    %c0_i32_0 = arith.constant 0 : i32
    %c0_i32_1 = arith.constant 0 : i32
    return %c0_i32, %c0_i32_0 : i32, i32
  }
  func.func @transform_9(%arg0: i32) -> (i32, i32) {
    %c0_i32 = arith.constant 0 : i32
    %c0_i32_0 = arith.constant 0 : i32
    %c0_i32_1 = arith.constant 0 : i32
    return %c0_i32, %c0_i32_0 : i32, i32
  }
  func.func @transform_10(%arg0: i32) -> (i32, i32) {
    %c0_i32 = arith.constant 0 : i32
    %c0_i32_0 = arith.constant 0 : i32
    %c0_i32_1 = arith.constant 0 : i32
    return %c0_i32, %c0_i32_0 : i32, i32
  }
  func.func @transform_11(%arg0: i32) -> (i32, i32) {
    %c0_i32 = arith.constant 0 : i32
    %c0_i32_0 = arith.constant 0 : i32
    %c0_i32_1 = arith.constant 0 : i32
    return %c0_i32, %c0_i32_0 : i32, i32
  }
  func.func @transform_12(%arg0: i32) -> (i32, i32) {
    %c0_i32 = arith.constant 0 : i32
    %c0_i32_0 = arith.constant 0 : i32
    %c0_i32_1 = arith.constant 0 : i32
    return %c0_i32, %c0_i32_0 : i32, i32
  }
  func.func @transform_13(%arg0: i32) -> (i32, i32) {
    %c0_i32 = arith.constant 0 : i32
    %c0_i32_0 = arith.constant 0 : i32
    %c0_i32_1 = arith.constant 0 : i32
    return %c0_i32, %c0_i32_0 : i32, i32
  }
  func.func @transform_14(%arg0: i32) -> (i32, i32, i32) {
    %c0_i32 = arith.constant 0 : i32
    %c0_i32_0 = arith.constant 0 : i32
    %c0_i32_1 = arith.constant 0 : i32
    return %arg0, %c0_i32, %c0_i32_0 : i32, i32, i32
  }
}

</mosaic_0001>

<bundles_post_ra>
// kernel: tpu_custom_call.1
= control target key start
LH: loop header
LB: loop body
LE: loop exit
PB: predicated region body
PF: predicated region fallthrough
CT: control target
= control target key end

     0   :  { %s5012_s0 = inlined_call_operand.vmem [shape: bf16[2,256,150], index: 0, kind: input, shape index: {}]   ;;  %s5013_s1 = inlined_call_operand.vmem [shape: bf16[150,128], index: 1, kind: input, shape index: {}]   ;;  %s5014_s2 = inlined_call_operand.vmem [shape: bf16[1,128], index: 2, kind: input, shape index: {}]   ;;  %s5015_s3 = inlined_call_operand.vmem [shape: bf16[640,128], index: 3, kind: input, shape index: {}]   ;;  %s5016_s4 = inlined_call_operand.vmem [shape: bf16[1,128], index: 4, kind: input, shape index: {}]   ;;  %s5017_s5 = inlined_call_operand.vmem [shape: bf16[128,128], index: 5, kind: input, shape index: {}]   ;;  %s5018_s6 = inlined_call_operand.vmem [shape: f32[1,128], index: 6, kind: input, shape index: {}]   ;;  %s5019_s7 = inlined_call_operand.vmem [shape: bf16[128,128], index: 7, kind: input, shape index: {}]   ;;  %s5020_s8 = inlined_call_operand.vmem [shape: bf16[128,128], index: 8, kind: input, shape index: {}]   ;;  %s5021_s9 = inlined_call_operand.vmem [shape: f32[1,128], index: 9, kind: input, shape index: {}]   ;;  %s5022_s10 = inlined_call_operand.vmem [shape: bf16[128,64], index: 10, kind: input, shape index: {}]   ;;  %s5023_s11 = inlined_call_operand.vmem [shape: f32[1,64], index: 11, kind: input, shape index: {}]   ;;  %s5024_s12 = inlined_call_operand.vmem [shape: bf16[64,128], index: 12, kind: input, shape index: {}]   ;;  %s5025_s13 = inlined_call_operand.vmem [shape: f32[1,128], index: 13, kind: input, shape index: {}]   ;;  %s5026_s14 = inlined_call_operand.hbm [shape: f32[2,8,128], index: 14, kind: output, shape index: {}]  }
   0x1   :  { %5033 = sst [smem:[#allocation27_spill]] %s5012_s0 }
   0x2   :  { %19 = vsyncpa [#allocation5], 0 }
   0x3   :  { %21 = vsyncpa [#allocation5 + $0x1], 0  ;;  %s4032_s29 = smov 0   ;;  %s4034_s30 = smov 0  }
   0x4   :  { %s4036_s15 = smov 0   ;;  %s4038_s16 = smov 0  }
   0x5 LB: > { %5034 = sst [smem:[#allocation7_spill]] %s3947_s15  ;;  %s4053_s17 = sadd.s32 4294967295, %s3951_s16   ;;  %s3951_s16 = sphi %s4038_s16, %s5076_s16   ;;  %s3947_s15 = sphi %s4036_s15, %s5078_s15   ;;  %s3943_s30 = sphi %s4034_s30, %s5080_s30   ;;  %s3939_s29 = sphi %s4032_s29, %s5079_s29  }
   0x6   : > { %s3074_s18 = sadd.s32 4294967294, %s3951_s16   ;;  %s4057_s19 = sadd.s32 1, %s3951_s16  }
   0x7   : > { %5035 = sst [smem:[#allocation8_spill]] %s4057_s19  ;;  %s333_s20 = sadd.s32 1, %s3947_s15 }
   0x8   : > { %s330_s21 = ssub.s32 %s3951_s16, %s4057_s19  ;;  %p343_p0 = scmp.ne.s32.totalorder %s3947_s15, %s3943_s30 }
   0x9   : > { %p331_p1 = scmp.eq.s32.totalorder %s330_s21, 0  ;;  %p344_p2 = scmp.eq.s32.totalorder %s4053_s17, 1 }
   0xa   : > { %p349_p3 = scmp.ne.s32.totalorder %s3943_s30, %s3939_s29  ;;  %p350_p4 = scmp.eq.s32.totalorder %s3074_s18, 1 }
   0xb   : > { %s4068_s22 = scalar_select %p331_p1, %s3947_s15, %s333_s20  }
   0xc   : > { %p4070_p5 = por %p344_p2, %p343_p0  ;;  %p4074_p6 = por %p350_p4, %p349_p3 }
   0xd   : > { %5036 = sst [smem:[#allocation9_spill]] %s4068_s22  ;;  %p3077_p7 = scmp.ge.s32.totalorder %s3951_s16, 1 }
   0xe   : > { %p415_p8 = scmp.lt.s32.totalorder %s3951_s16, 3 }
  0x10   : > { %p416_p9 = pnand %p3077_p7, %p415_p8 }
  0x12   : > { %419 = sbr.rel (%p416_p9) target bundleno = 1722 (0x6ba), region = 76 }
  0x19   : > { %v3739_v0 = vld [vmem:[%s5013_s1] sm:$0xff]   ;;  %v5030_v1 = vmov 0   ;;  %v3740_v2 = vld [vmem:[%s5013_s1 + $0x8] sm:$0xff]   ;;  %p461_p10 = scmp.lt.s32.totalorder %s4053_s17, 1  ;;  %v3741_v3 = vld [vmem:[%s5013_s1 + $0x10] sm:$0xff]   ;;  %s5039_s0 = sld [smem:[#allocation27_spill]] }
  0x1a   : > { %772 = vmatprep.subr.bf16.mxu0 %v5030_v1  ;;  %vm719_vm0 = vcmask 179200   ;;  %v3742_v4 = vld [vmem:[%s5013_s1 + $0x18] sm:$0xff]   ;;  %v3743_v6 = vld [vmem:[%s5013_s1 + $0x20] sm:$0xff]   ;;  %v3744_v7 = vld [vmem:[%s5013_s1 + $0x28] sm:$0xff]   ;;  %vm768_vm1 = vcmask 1042432   ;;  %vm1005_vm2 = vcmask 1046528  }
  0x1b   : > { %773 = vmatpush1.bf16.msra.mxu0 %v3739_v0  ;;  %s462_s18 = scalar_select %p461_p10, %s4053_s17, 1  ;;  %v3745_v8 = vld [vmem:[%s5013_s1 + $0x30] sm:$0xff]   ;;  %v3746_v9 = vld [vmem:[%s5013_s1 + $0x38] sm:$0xff]   ;;  %v3747_v10 = vld [vmem:[%s5013_s1 + $0x40] sm:$0xff]   ;;  %vm1149_vm3 = vcmask 1043456   ;;  %vm1101_vm4 = vcmask 1044480  }
  0x1c   : > { %774 = vmatprep.subr.bf16.mxu0 %v5030_v1  ;;  %v3748_v11 = vld [vmem:[%s5013_s1 + $0x48] ss:$0 sps:$4 sm:$0x77]   ;;  %v3797_v12 = vld [vmem:[%s5015_s3 + $0x40] sm:$0xff]   ;;  %v3801_v20 = vld [vmem:[%s5015_s3 + $0x50] sm:$0xff]   ;;  %vm1053_vm5 = vcmask 1045504  }
  0x1d   : > { %s3224_s25 = sshll.u32 %s462_s18, 8  ;;  %v3798_v13 = vld [vmem:[%s5015_s3] sm:$0xff]   ;;  %v3799_v14 = vld [vmem:[%s5015_s3 + $0x48] sm:$0xff]   ;;  %v770_v15 = vsel %vm768_vm1, %v3748_v11, 0  ;;  %3225 = vmatprep.subr.bf16.mxu1 %v3797_v12  ;;  %v3803_v21 = vld [vmem:[%s5015_s3 + $0x10] sm:$0xff]   ;;  %vm3955_vm6 = vmmov 0  }
  0x1e   : > { %v3800_v17 = vld [vmem:[%s5015_s3 + $0x8] sm:$0xff]   ;;  %3226 = vmatpush3.bf16.msra.mxu1 %v3798_v13  ;;  %v3802_v19 = vld [vmem:[%s5015_s3 + $0x100] sm:$0xff]   ;;  %v3804_v43 = vld [vmem:[%s5015_s3 + $0x58] sm:$0xff]   ;;  %s3221_s28 = sshll.u32 %s4053_s17, 7 }
  0x1f   : > { %775 = vmatpush1.bf16.msra.mxu0 %v3740_v2  ;;  %s4097_s15 = scalar_lea.vmem %s5039_s0, %s3224_s25  ;;  %3227 = vmatprep.subr.bf16.mxu1 %v3799_v14  ;;  %v3805_v42 = vld [vmem:[%s5015_s3 + $0x108] sm:$0xff]   ;;  %v3806_v44 = vld [vmem:[%s5015_s3 + $0x18] sm:$0xff]   ;;  %v3808_v47 = vld [vmem:[%s5015_s3 + $0x110] sm:$0xff]   ;;  %s4970_s0 = scalar_lea.hbm %s5026_s14, %s3221_s28 }
  0x20   : > { %776 = vmatprep.subr.bf16.mxu0 %v5030_v1  ;;  %v3751_v5 = vld [vmem:[%s4097_s15 + $0x4] ss:$8 sps:$4 sm:$0xff]   ;;  %v3749_v16 = vld [vmem:[%s4097_s15] ss:$8 sps:$4 sm:$0xff]   ;;  %v3752_v18 = vld [vmem:[%s4097_s15 + $0x14] ss:$8 sps:$4 sm:$0xff]  }
  0x21   : > { %3123 = vmatprep.mubr.msk.bf16.mxu0 %vm719_vm0, %v3751_v5  ;;  %v3754_v22 = vld [vmem:[%s4097_s15 + $0x10] ss:$8 sps:$4 sm:$0xff]   ;;  %v3755_v23 = vld [vmem:[%s4097_s15 + $0x24] ss:$8 sps:$4 sm:$0xff]   ;;  %v3757_v24 = vld [vmem:[%s4097_s15 + $0x20] ss:$8 sps:$4 sm:$0xff]  }
  0x22   : > { %3228 = vmatpush3.bf16.msra.mxu1 %v3800_v17  ;;  %v3758_v25 = vld [vmem:[%s4097_s15 + $0x34] ss:$8 sps:$4 sm:$0xff]   ;;  %v3760_v26 = vld [vmem:[%s4097_s15 + $0x30] ss:$8 sps:$4 sm:$0xff]   ;;  %v3761_v27 = vld [vmem:[%s4097_s15 + $0x44] ss:$8 sps:$4 sm:$0xff]  }
  0x23   : > { %777 = vmatpush1.bf16.msra.mxu0 %v3741_v3  ;;  %3229 = vmatprep.subr.bf16.mxu1 %v3801_v20  ;;  %v3763_v28 = vld [vmem:[%s4097_s15 + $0x40] ss:$8 sps:$4 sm:$0xff]   ;;  %v3764_v29 = vld [vmem:[%s4097_s15 + $0x54] ss:$8 sps:$4 sm:$0xff]   ;;  %v3766_v30 = vld [vmem:[%s4097_s15 + $0x50] ss:$8 sps:$4 sm:$0xff]  }
  0x24   : > { %778 = vmatprep.subr.bf16.mxu0 %v5030_v1  ;;  %v3767_v31 = vld [vmem:[%s4097_s15 + $0x64] ss:$8 sps:$4 sm:$0xff]   ;;  %v3769_v32 = vld [vmem:[%s4097_s15 + $0x60] ss:$8 sps:$4 sm:$0xff]   ;;  %v3770_v33 = vld [vmem:[%s4097_s15 + $0x74] ss:$8 sps:$4 sm:$0xff]  }
  0x25   : > { %v3772_v34 = vld [vmem:[%s4097_s15 + $0x70] ss:$8 sps:$4 sm:$0xff]   ;;  %v3773_v35 = vld [vmem:[%s4097_s15 + $0x84] ss:$8 sps:$4 sm:$0xff]   ;;  %v3775_v36 = vld [vmem:[%s4097_s15 + $0x80] ss:$8 sps:$4 sm:$0xff]  }
  0x26   : > { %3230 = vmatpush3.bf16.msra.mxu1 %v3803_v21  ;;  %v3776_v37 = vld [vmem:[%s4097_s15 + $0x94] ss:$8 sps:$4 sm:$0xff]   ;;  %v3778_v38 = vld [vmem:[%s4097_s15 + $0x90] ss:$8 sps:$4 sm:$0xff]   ;;  %v3779_v39 = vld [vmem:[%s4097_s15 + $0xa4] ss:$8 sps:$4 sm:$0xff]  }
  0x27   : > { %779 = vmatpush1.bf16.msra.mxu0 %v3742_v4  ;;  %v3781_v40 = vld [vmem:[%s4097_s15 + $0xa0] ss:$8 sps:$4 sm:$0xff]   ;;  %v3782_v41 = vld [vmem:[%s4097_s15 + $0xb4] ss:$8 sps:$4 sm:$0xff]   ;;  %v3784_v45 = vld [vmem:[%s4097_s15 + $0xb0] ss:$8 sps:$4 sm:$0xff]   ;;  %3231 = vmatprep.subr.bf16.mxu1 %v3804_v43 }
  0x28   : > { %780 = vmatprep.subr.bf16.mxu0 %v5030_v1  ;;  %v3785_v46 = vld [vmem:[%s4097_s15 + $0xc4] ss:$8 sps:$4 sm:$0xff]   ;;  %v3811_v50 = vld [vmem:[%s5015_s3 + $0x118] sm:$0xff]   ;;  %v3787_v53 = vld [vmem:[%s4097_s15 + $0xc0] ss:$8 sps:$4 sm:$0xff]  }
  0x29   : > { %v3807_v48 = vld [vmem:[%s5015_s3 + $0x60] sm:$0xff]   ;;  %v3810_v51 = vld [vmem:[%s5015_s3 + $0x68] sm:$0xff]   ;;  %v3788_v54 = vld [vmem:[%s4097_s15 + $0xd4] ss:$8 sps:$4 sm:$0xff]  }
  0x2a   : > { %3232 = vmatpush3.bf16.msra.mxu1 %v3806_v44  ;;  %v3809_v49 = vld [vmem:[%s5015_s3 + $0x20] sm:$0xff]   ;;  %v3812_v52 = vld [vmem:[%s5015_s3 + $0x28] sm:$0xff]   ;;  %v3813_v56 = vld [vmem:[%s5015_s3 + $0x70] sm:$0xff]  }
  0x2b   : > { %781 = vmatpush1.bf16.msra.mxu0 %v3743_v6  ;;  %3233 = vmatprep.subr.bf16.mxu1 %v3807_v48  ;;  %v3814_v55 = vld [vmem:[%s5015_s3 + $0x120] sm:$0xff]   ;;  %v3815_v57 = vld [vmem:[%s5015_s3 + $0x30] sm:$0xff]   ;;  %v3817_v58 = vld [vmem:[%s5015_s3 + $0x128] sm:$0xff]   ;;  %v953_v6 = vlaneseq }
  0x2c   : > { %782 = vmatprep.subr.bf16.mxu0 %v5030_v1  ;;  %v3816_v59 = vld [vmem:[%s5015_s3 + $0x78] sm:$0xff]   ;;  %v3791_v62 = vld [vmem:[%s4097_s15 + $0xe4] ss:$8 sps:$4 sm:$0xff]   ;;  %v3820_v63 = vld [vmem:[%s5015_s3 + $0x130] sm:$0xff]  }
  0x2d   : > { %v3818_v60 = vld [vmem:[%s5015_s3 + $0x38] sm:$0xff]   ;;  %v3819_v2 = vld [vmem:[%s5015_s3 + $0xc0] sm:$0xff]   ;;  %v3825_v48 = vld [vmem:[%s5015_s3 + $0xd0] sm:$0xff]  }
  0x2e   : > { %3234 = vmatpush3.bf16.msra.mxu1 %v3809_v49  ;;  %v3790_v61 = vld [vmem:[%s4097_s15 + $0xd0] ss:$8 sps:$4 sm:$0xff]   ;;  %v3793_v3 = vld [vmem:[%s4097_s15 + $0xe0] ss:$8 sps:$4 sm:$0xff]   ;;  %v3794_v4 = vld [vmem:[%s4097_s15 + $0xf4] ss:$8 sps:$4 sm:$0xff]  }
  0x2f   : > { %783 = vmatpush1.bf16.msra.mxu0 %v3744_v7  ;;  %3235 = vmatprep.subr.bf16.mxu1 %v3810_v51  ;;  %v3822_v0 = vld [vmem:[%s5015_s3 + $0x138] sm:$0xff]   ;;  %v4250_v7 = vshrl.u32 %v953_v6, 7 }
  0x30   : > { %784 = vmatprep.subr.bf16.mxu0 %v5030_v1  ;;  %v3796_v5 = vld [vmem:[%s4097_s15 + $0xf0] ss:$8 sps:$4 sm:$0xff]   ;;  %s458_s15 = sand.u32 1, %s3943_s30  }
  0x31   : > { %v5032_v11 = vsub.s32 0, %v4250_v7  ;;  %s3078_s25 = sshll.u32 %s458_s15, 3  ;;  %s3002_s19 = scalar_lea.sflag [#allocation5], %s458_s15 }
  0x32   : > { %3236 = vmatpush3.bf16.msra.mxu1 %v3812_v52  ;;  %s460_s18 = scalar_lea.vmem [#allocation4], %s3078_s25  ;;  %s3956_s25 = smov [#allocation4]  }
  0x33   : > { %785 = vmatpush1.bf16.msra.mxu0 %v3745_v8  ;;  %3237 = vmatprep.subr.bf16.mxu1 %v3813_v56  ;;  %v949_v8 = vld [vmem:[%s5014_s2] sm:$0x1]  ;;  %v3826_v56 = vld [vmem:[%s5015_s3 + $0x90] sm:$0xff]   ;;  %s3015_s20 = sshll.u32 %s460_s18, 4  ;;  %s3893_s26 = sshll.u32 %s3956_s25, 4  ;;  %s4972_s20 = int_to_ptr.vmem [resolvable:$true] %s3015_s20  ;;  %s3894_s26 = int_to_ptr.vmem [resolvable:$false] %s3893_s26 }
  0x34   : > { %786 = vmatprep.subr.bf16.mxu0 %v5030_v1  ;;  %s3889_s17 = scalar_lea.vmem %s4972_s20, 128  ;;  %s3895_s27 = scalar_lea.vmem %s3894_s26, 256 }
  0x35   : > { %p3890_p11 = scmp.ne.s32.totalorder %s4972_s20, %s3889_s17  ;;  %p3896_p0 = scmp.lt.s32.totalorder %s4972_s20, %s3894_s26 }
  0x36   : > { %3238 = vmatpush3.bf16.msra.mxu1 %v3815_v57  ;;  %p3897_p1 = scmp.lt.s32.totalorder %s3895_s27, %s3889_s17 }
  0x37   : > { %787 = vmatpush1.bf16.msra.mxu0 %v3746_v9  ;;  %3239 = vmatprep.subr.bf16.mxu1 %v3816_v59  ;;  %p3891_p12 = pnand %p3890_p11, %p4070_p5 }
  0x38   : > { %788 = vmatprep.subr.bf16.mxu0 %v5030_v1  ;;  %p3898_p2 = por %p3897_p1, %p3896_p0 }
  0x39   : > { %p3892_p13 = pneg %p3891_p12 }
  0x3a   : > { %3240 = vmatpush3.bf16.msra.mxu1 %v3818_v60 }
  0x3b   : > { %789 = vmatpush1.bf16.msra.mxu0 %v3747_v10  ;;  %3337 = vmatprep.subr.bf16.mxu1 %v3819_v2  ;;  %v951_v10 = vpack.i.b16 %v949_v8, %v949_v8  ;;  %v3828_v2 = vld [vmem:[%s5015_s3 + $0x98] sm:$0xff]   ;;  %p3899_p3 = pnand %p3898_p2, %p3892_p13 }
  0x3c   : > { %790 = vmatprep.subr.bf16.mxu0 %v5030_v1 }
  0x3f   : > { %791 = vmatpush1.bf16.msra.mxu0 %v770_v15 }
  0x40   : > { %3529 = vmatprep.subr.bf16.mxu0 %v3802_v19 }
  0x42   : > { %805 = vmatmul.mubr.bf16.vlgmr.msra.gmra.mrb[0].mxu0 %v3749_v16  ;;  %v4258_v16 = vrot.slane %v951_v10, %v5032_v11 }
  0x43   : > { %3124 = vmatprep.mubr.msk.bf16.mxu0 %vm719_vm0, %v3752_v18  ;;  %3530 = vmatpush3.bf16.msra.mxu0 %v3802_v19 }
  0x44   : > { %3531 = vmatprep.subr.bf16.mxu0 %v3805_v42 }
  0x47   : > { %3532 = vmatpush3.bf16.msra.mxu0 %v3805_v42  ;;  %v3823_v42 = vld [vmem:[%s5015_s3 + $0xc8] sm:$0xff]  }
  0x48   : > { %3533 = vmatprep.subr.bf16.mxu0 %v3808_v47 }
  0x4a   : > { %813 = vmatmul.mubr.bf16.gmra.mrb[4].mxu0 %v3754_v22 }
  0x4b   : > { %3125 = vmatprep.mubr.msk.bf16.mxu0 %vm719_vm0, %v3755_v23  ;;  %3534 = vmatpush3.bf16.msra.mxu0 %v3808_v47 }
  0x4c   : > { %3535 = vmatprep.subr.bf16.mxu0 %v3811_v50 }
  0x4f   : > { %3536 = vmatpush3.bf16.msra.mxu0 %v3811_v50 }
  0x50   : > { %3537 = vmatprep.subr.bf16.mxu0 %v3814_v55 }
  0x52   : > { %821 = vmatmul.mubr.bf16.gmra.mrb[8].mxu0 %v3757_v24 }
  0x53   : > { %3126 = vmatprep.mubr.msk.bf16.mxu0 %vm719_vm0, %v3758_v25  ;;  %3538 = vmatpush3.bf16.msra.mxu0 %v3814_v55 }
  0x54   : > { %3539 = vmatprep.subr.bf16.mxu0 %v3817_v58 }
  0x57   : > { %3540 = vmatpush3.bf16.msra.mxu0 %v3817_v58 }
  0x58   : > { %3541 = vmatprep.subr.bf16.mxu0 %v3820_v63 }
  0x5a   : > { %829 = vmatmul.mubr.bf16.gmra.mrb[12].mxu0 %v3760_v26 }
  0x5b   : > { %3127 = vmatprep.mubr.msk.bf16.mxu0 %vm719_vm0, %v3761_v27  ;;  %3542 = vmatpush3.bf16.msra.mxu0 %v3820_v63 }
  0x5c   : > { %3543 = vmatprep.subr.bf16.mxu0 %v3822_v0 }
  0x5f   : > { %3544 = vmatpush3.bf16.msra.mxu0 %v3822_v0 }
  0x62   : > { %837 = vmatmul.mubr.bf16.gmra.mrb[16].mxu0 %v3763_v28 }
  0x63   : > { %3128 = vmatprep.mubr.msk.bf16.mxu0 %vm719_vm0, %v3764_v29 }
  0x6a   : > { %845 = vmatmul.mubr.bf16.gmra.mrb[20].mxu0 %v3766_v30 }
  0x6b   : > { %3129 = vmatprep.mubr.msk.bf16.mxu0 %vm719_vm0, %v3767_v31 }
  0x72   : > { %853 = vmatmul.mubr.bf16.gmra.mrb[24].mxu0 %v3769_v32 }
  0x73   : > { %3130 = vmatprep.mubr.msk.bf16.mxu0 %vm719_vm0, %v3770_v33 }
  0x7a   : > { %861 = vmatmul.mubr.bf16.gmra.mrb[28].mxu0 %v3772_v34 }
  0x7b   : > { %3131 = vmatprep.mubr.msk.bf16.mxu0 %vm719_vm0, %v3773_v35 }
  0x82   : > { %869 = vmatmul.mubr.bf16.gmra.mrb[32].mxu0 %v3775_v36  ;;  %v3821_v36 = vld [vmem:[%s5015_s3 + $0x80] sm:$0xff]  }
  0x83   : > { %3132 = vmatprep.mubr.msk.bf16.mxu0 %vm719_vm0, %v3776_v37 }
  0x8a   : > { %877 = vmatmul.mubr.bf16.gmra.mrb[36].mxu0 %v3778_v38 }
  0x8b   : > { %3133 = vmatprep.mubr.msk.bf16.mxu0 %vm719_vm0, %v3779_v39 }
  0x92   : > { %885 = vmatmul.mubr.bf16.gmra.mrb[40].mxu0 %v3781_v40 }
  0x93   : > { %3134 = vmatprep.mubr.msk.bf16.mxu0 %vm719_vm0, %v3782_v41 }
  0x9a   : > { %893 = vmatmul.mubr.bf16.gmra.mrb[44].mxu0 %v3784_v45 }
  0x9b   : > { %3135 = vmatprep.mubr.msk.bf16.mxu0 %vm719_vm0, %v3785_v46  ;;  %v3824_v46 = vld [vmem:[%s5015_s3 + $0x88] sm:$0xff]  }
  0xa2   : > { %901 = vmatmul.mubr.bf16.gmra.mrb[48].mxu0 %v3787_v53 }
  0xa3   : > { %3136 = vmatprep.mubr.msk.bf16.mxu0 %vm719_vm0, %v3788_v54 }
  0xaa   : > { %909 = vmatmul.mubr.bf16.gmra.mrb[52].mxu0 %v3790_v61  ;;  %v3827_v61 = vld [vmem:[%s5015_s3 + $0xd8] sm:$0xff]  }
  0xab   : > { %3137 = vmatprep.mubr.msk.bf16.mxu0 %vm719_vm0, %v3791_v62 }
  0xb2   : > { %917 = vmatmul.mubr.bf16.gmra.mrb[56].mxu0 %v3793_v3 }
  0xb3   : > { %3138 = vmatprep.mubr.msk.bf16.mxu0 %vm719_vm0, %v3794_v4  ;;  %v3829_v4 = vld [vmem:[%s5015_s3 + $0xe0] sm:$0xff]  }
  0xba   : > { %925 = vmatmul.mubr.bf16.gmra.mrb[60].mxu0 %v3796_v5 }
 0x115   : > { %v806_v9 = vpop.f32.mrb[0].mxu0 }
 0x116   : > { %v808_v12 = vpop.f32.mrb[1].mxu0 }
 0x117   : > { %v809_v13 = vpop.f32.mrb[2].mxu0 }
 0x118   : > { %v933_v14 = vpack.c.bf16 %v809_v13, %v806_v9  ;;  %v811_v15 = vpop.f32.mrb[3].mxu0 }
 0x11a   : > { %v957_v17 = vadd.bf16 %v4258_v16, %v933_v14  ;;  %v3830_v14 = vld [vmem:[%s5015_s3 + $0xa0] sm:$0xff]  }
 0x11c   : > { %v973_v23 = vmax.bf16 %v5030_v1, %v957_v17 }
 0x11d   : > { %v814_v18 = vpop.f32.mrb[4].mxu0 }
 0x11e   : > { %v816_v19 = vpop.f32.mrb[5].mxu0  ;;  %v1006_v27 = vrot.slane %v973_v23, 1  ;;  %v1150_v28 = vrot.slane %v973_v23, 4  ;;  %v1102_v29 = vrot.slane %v973_v23, 3  ;;  %v1054_v37 = vrot.slane %v973_v23, 2 }
 0x11f   : > { %v817_v20 = vpop.f32.mrb[6].mxu0 }
 0x120   : > { %v934_v21 = vpack.c.bf16 %v817_v20, %v814_v18  ;;  %v819_v22 = vpop.f32.mrb[7].mxu0  ;;  %v3831_v20 = vld [vmem:[%s5015_s3 + $0xe8] sm:$0xff]  }
 0x122   : > { %v958_v24 = vadd.bf16 %v4258_v16, %v934_v21 }
 0x124   : > { %v974_v25 = vmax.bf16 %v5030_v1, %v958_v24  ;;  %v3832_v24 = vld [vmem:[%s5015_s3 + $0xa8] sm:$0xff]  }
 0x125   : > { %v822_v26 = vpop.f32.mrb[8].mxu0 }
 0x126   : > { %v824_v30 = vpop.f32.mrb[9].mxu0  ;;  %v1007_v31 = vrot.slane %v974_v25, 1  ;;  %v1151_v32 = vrot.slane %v974_v25, 4  ;;  %v1103_v33 = vrot.slane %v974_v25, 3  ;;  %v1055_v34 = vrot.slane %v974_v25, 2 }
 0x127   : > { %v825_v35 = vpop.f32.mrb[10].mxu0 }
 0x128   : > { %v935_v38 = vpack.c.bf16 %v825_v35, %v822_v26  ;;  %v827_v39 = vpop.f32.mrb[11].mxu0  ;;  %v1008_v40 = vsel %vm1005_vm2, %v1006_v27, %v1007_v31  ;;  %v1152_v41 = vsel %vm1149_vm3, %v1150_v28, %v1151_v32  ;;  %v4273_v43 = vsel %vm1101_vm4, %v1102_v29, %v1103_v33  ;;  %v3833_v26 = vld [vmem:[%s5015_s3 + $0xf0] sm:$0xff]  }
 0x129   : > { %1549 = vmatprep.mubr.bf16.mxu1 %v1008_v40  ;;  %3545 = vmatprep.mubr.bf16.mxu0 %v1152_v41  ;;  %v4276_v44 = vsel %vm1053_vm5, %v1054_v37, %v1055_v34  ;;  %v3835_v39 = vld [vmem:[%s5015_s3 + $0xf8] sm:$0xff]  }
 0x12a   : > { %v959_v45 = vadd.bf16 %v4258_v16, %v935_v38  ;;  %1550 = vmatmul.mubr.bf16.vlgmr.msra.gmra.mrb[0].mxu1 %v973_v23 }
 0x12b   : > { %3338 = vmatpush3.bf16.msra.mxu1 %v3821_v36 }
 0x12c   : > { %v975_v47 = vmax.bf16 %v5030_v1, %v959_v45  ;;  %3339 = vmatprep.subr.bf16.mxu1 %v3823_v42  ;;  %v3836_v45 = vld [vmem:[%s5015_s3 + $0xb8] sm:$0xff]  }
 0x12d   : > { %v830_v49 = vpop.f32.mrb[12].mxu0 }
 0x12e   : > { %v832_v50 = vpop.f32.mrb[13].mxu0  ;;  %v1009_v51 = vrot.slane %v975_v47, 1  ;;  %v1153_v52 = vrot.slane %v975_v47, 4  ;;  %v1105_v53 = vrot.slane %v975_v47, 3  ;;  %v1057_v54 = vrot.slane %v975_v47, 2 }
 0x12f   : > { %v833_v55 = vpop.f32.mrb[14].mxu0  ;;  %3340 = vmatpush3.bf16.msra.mxu1 %v3824_v46 }
 0x130   : > { %v936_v57 = vpack.c.bf16 %v833_v55, %v830_v49  ;;  %v835_v58 = vpop.f32.mrb[15].mxu0  ;;  %v1010_v59 = vsel %vm1005_vm2, %v1007_v31, %v1009_v51  ;;  %v1154_v60 = vsel %vm1149_vm3, %v1151_v32, %v1153_v52  ;;  %3341 = vmatprep.subr.bf16.mxu1 %v3825_v48  ;;  %v4295_v62 = vsel %vm1101_vm4, %v1103_v33, %v1105_v53 }
 0x131   : > { %1557 = vmatprep.mubr.bf16.mxu1 %v1010_v59  ;;  %3546 = vmatmul.mubr.bf16.vlgmr.msra.gmra.mrb[64].mxu0 %v1154_v60  ;;  %v4298_v63 = vsel %vm1053_vm5, %v1055_v34, %v1057_v54  ;;  %v3834_v34 = vld [vmem:[%s5015_s3 + $0xb0] sm:$0xff]  }
 0x132   : > { %v960_v0 = vadd.bf16 %v4258_v16, %v936_v57  ;;  %1558 = vmatmul.mubr.bf16.gmra.mrb[4].mxu1 %v974_v25 }
 0x133   : > { %3342 = vmatpush3.bf16.msra.mxu1 %v3826_v56 }
 0x134   : > { %v976_v3 = vmax.bf16 %v5030_v1, %v960_v0  ;;  %3343 = vmatprep.subr.bf16.mxu1 %v3827_v61 }
 0x135   : > { %v838_v5 = vpop.f32.mrb[16].mxu0 }
 0x136   : > { %v840_v6 = vpop.f32.mrb[17].mxu0  ;;  %v1011_v8 = vrot.slane %v976_v3, 1  ;;  %v1155_v9 = vrot.slane %v976_v3, 4  ;;  %v1107_v10 = vrot.slane %v976_v3, 3  ;;  %v1059_v12 = vrot.slane %v976_v3, 2 }
 0x137   : > { %v841_v13 = vpop.f32.mrb[18].mxu0  ;;  %3344 = vmatpush3.bf16.msra.mxu1 %v3828_v2 }
 0x138   : > { %v937_v15 = vpack.c.bf16 %v841_v13, %v838_v5  ;;  %v843_v17 = vpop.f32.mrb[19].mxu0  ;;  %v1012_v18 = vsel %vm1005_vm2, %v1009_v51, %v1011_v8  ;;  %v1156_v19 = vsel %vm1149_vm3, %v1153_v52, %v1155_v9  ;;  %3345 = vmatprep.subr.bf16.mxu1 %v3829_v4  ;;  %v4317_v21 = vsel %vm1101_vm4, %v1105_v53, %v1107_v10 }
 0x139   : > { %1565 = vmatprep.mubr.bf16.mxu1 %v1012_v18  ;;  %3549 = vmatprep.mubr.bf16.mxu0 %v1156_v19  ;;  %v4320_v22 = vsel %vm1053_vm5, %v1057_v54, %v1059_v12 }
 0x13a   : > { %v961_v23 = vadd.bf16 %v4258_v16, %v937_v15  ;;  %1566 = vmatmul.mubr.bf16.gmra.mrb[8].mxu1 %v975_v47 }
 0x13b   : > { %3346 = vmatpush3.bf16.msra.mxu1 %v3830_v14 }
 0x13c   : > { %v977_v25 = vmax.bf16 %v5030_v1, %v961_v23  ;;  %3347 = vmatprep.subr.bf16.mxu1 %v3831_v20 }
 0x13d   : > { %v846_v27 = vpop.f32.mrb[20].mxu0 }
 0x13e   : > { %v848_v28 = vpop.f32.mrb[21].mxu0  ;;  %v1013_v29 = vrot.slane %v977_v25, 1  ;;  %v1157_v30 = vrot.slane %v977_v25, 4  ;;  %v1109_v31 = vrot.slane %v977_v25, 3  ;;  %v1061_v32 = vrot.slane %v977_v25, 2 }
 0x13f   : > { %v849_v33 = vpop.f32.mrb[22].mxu0  ;;  %3348 = vmatpush3.bf16.msra.mxu1 %v3832_v24 }
 0x140   : > { %v938_v35 = vpack.c.bf16 %v849_v33, %v846_v27  ;;  %v851_v36 = vpop.f32.mrb[23].mxu0  ;;  %v1014_v37 = vsel %vm1005_vm2, %v1011_v8, %v1013_v29  ;;  %v1158_v38 = vsel %vm1149_vm3, %v1155_v9, %v1157_v30  ;;  %3349 = vmatprep.subr.bf16.mxu1 %v3833_v26  ;;  %v4339_v40 = vsel %vm1101_vm4, %v1107_v10, %v1109_v31 }
 0x141   : > { %1573 = vmatprep.mubr.bf16.mxu1 %v1014_v37  ;;  %3550 = vmatmul.mubr.bf16.gmra.mrb[68].mxu0 %v1158_v38  ;;  %v4342_v41 = vsel %vm1053_vm5, %v1059_v12, %v1061_v32 }
 0x142   : > { %v962_v42 = vadd.bf16 %v4258_v16, %v938_v35  ;;  %1574 = vmatmul.mubr.bf16.gmra.mrb[12].mxu1 %v976_v3 }
 0x143   : > { %3350 = vmatpush3.bf16.msra.mxu1 %v3834_v34 }
 0x144   : > { %v978_v46 = vmax.bf16 %v5030_v1, %v962_v42  ;;  %3351 = vmatprep.subr.bf16.mxu1 %v3835_v39 }
 0x145   : > { %v854_v47 = vpop.f32.mrb[24].mxu0 }
 0x146   : > { %v856_v48 = vpop.f32.mrb[25].mxu0  ;;  %v1015_v49 = vrot.slane %v978_v46, 1  ;;  %v1159_v50 = vrot.slane %v978_v46, 4  ;;  %v1111_v51 = vrot.slane %v978_v46, 3  ;;  %v1063_v52 = vrot.slane %v978_v46, 2 }
 0x147   : > { %v857_v53 = vpop.f32.mrb[26].mxu0  ;;  %3352 = vmatpush3.bf16.msra.mxu1 %v3836_v45 }
 0x148   : > { %v939_v54 = vpack.c.bf16 %v857_v53, %v854_v47  ;;  %v859_v55 = vpop.f32.mrb[27].mxu0  ;;  %v1016_v56 = vsel %vm1005_vm2, %v1013_v29, %v1015_v49  ;;  %v1160_v57 = vsel %vm1149_vm3, %v1157_v30, %v1159_v50  ;;  %v4352_v58 = vsel %vm1101_vm4, %v1109_v31, %v1111_v51 }
 0x149   : > { %1581 = vmatprep.mubr.bf16.mxu1 %v1016_v56  ;;  %3553 = vmatprep.mubr.bf16.mxu0 %v1160_v57  ;;  %v4355_v59 = vsel %vm1053_vm5, %v1061_v32, %v1063_v52 }
 0x14a   : > { %v963_v60 = vadd.bf16 %v4258_v16, %v939_v54  ;;  %1582 = vmatmul.mubr.bf16.gmra.mrb[16].mxu1 %v977_v25 }
 0x14c   : > { %v979_v61 = vmax.bf16 %v5030_v1, %v963_v60 }
 0x14d   : > { %v862_v0 = vpop.f32.mrb[28].mxu0 }
 0x14e   : > { %v864_v2 = vpop.f32.mrb[29].mxu0  ;;  %v1017_v3 = vrot.slane %v979_v61, 1  ;;  %v1161_v4 = vrot.slane %v979_v61, 4  ;;  %v1113_v5 = vrot.slane %v979_v61, 3  ;;  %v1065_v6 = vrot.slane %v979_v61, 2 }
 0x14f   : > { %v865_v8 = vpop.f32.mrb[30].mxu0 }
 0x150   : > { %v940_v9 = vpack.c.bf16 %v865_v8, %v862_v0  ;;  %v867_v10 = vpop.f32.mrb[31].mxu0  ;;  %v1018_v12 = vsel %vm1005_vm2, %v1015_v49, %v1017_v3  ;;  %v1162_v13 = vsel %vm1149_vm3, %v1159_v50, %v1161_v4  ;;  %v4362_v14 = vsel %vm1101_vm4, %v1111_v51, %v1113_v5 }
 0x151   : > { %1589 = vmatprep.mubr.bf16.mxu1 %v1018_v12  ;;  %3554 = vmatmul.mubr.bf16.gmra.mrb[72].mxu0 %v1162_v13  ;;  %v4365_v15 = vsel %vm1053_vm5, %v1063_v52, %v1065_v6 }
 0x152   : > { %v964_v17 = vadd.bf16 %v4258_v16, %v940_v9  ;;  %1590 = vmatmul.mubr.bf16.gmra.mrb[20].mxu1 %v978_v46 }
 0x154   : > { %v980_v18 = vmax.bf16 %v5030_v1, %v964_v17 }
 0x155   : > { %v870_v19 = vpop.f32.mrb[32].mxu0 }
 0x156   : > { %v872_v20 = vpop.f32.mrb[33].mxu0  ;;  %v1019_v23 = vrot.slane %v980_v18, 1  ;;  %v1163_v24 = vrot.slane %v980_v18, 4  ;;  %v1115_v25 = vrot.slane %v980_v18, 3  ;;  %v1067_v26 = vrot.slane %v980_v18, 2 }
 0x157   : > { %v873_v27 = vpop.f32.mrb[34].mxu0 }
 0x158   : > { %v941_v28 = vpack.c.bf16 %v873_v27, %v870_v19  ;;  %v875_v29 = vpop.f32.mrb[35].mxu0  ;;  %v1020_v30 = vsel %vm1005_vm2, %v1017_v3, %v1019_v23  ;;  %v1164_v31 = vsel %vm1149_vm3, %v1161_v4, %v1163_v24  ;;  %v4372_v32 = vsel %vm1101_vm4, %v1113_v5, %v1115_v25 }
 0x159   : > { %1597 = vmatprep.mubr.bf16.mxu1 %v1020_v30  ;;  %3557 = vmatprep.mubr.bf16.mxu0 %v1164_v31  ;;  %v4375_v33 = vsel %vm1053_vm5, %v1065_v6, %v1067_v26 }
 0x15a   : > { %v965_v34 = vadd.bf16 %v4258_v16, %v941_v28  ;;  %1598 = vmatmul.mubr.bf16.gmra.mrb[24].mxu1 %v979_v61 }
 0x15c   : > { %v981_v35 = vmax.bf16 %v5030_v1, %v965_v34 }
 0x15d   : > { %v878_v36 = vpop.f32.mrb[36].mxu0 }
 0x15e   : > { %v880_v37 = vpop.f32.mrb[37].mxu0  ;;  %v1021_v38 = vrot.slane %v981_v35, 1  ;;  %v1165_v39 = vrot.slane %v981_v35, 4  ;;  %v1117_v42 = vrot.slane %v981_v35, 3  ;;  %v1069_v45 = vrot.slane %v981_v35, 2 }
 0x15f   : > { %v881_v46 = vpop.f32.mrb[38].mxu0 }
 0x160   : > { %v942_v47 = vpack.c.bf16 %v881_v46, %v878_v36  ;;  %v883_v48 = vpop.f32.mrb[39].mxu0  ;;  %v1022_v49 = vsel %vm1005_vm2, %v1019_v23, %v1021_v38  ;;  %v1166_v50 = vsel %vm1149_vm3, %v1163_v24, %v1165_v39  ;;  %v4382_v51 = vsel %vm1101_vm4, %v1115_v25, %v1117_v42 }
 0x161   : > { %1605 = vmatprep.mubr.bf16.mxu1 %v1022_v49  ;;  %3558 = vmatmul.mubr.bf16.gmra.mrb[76].mxu0 %v1166_v50  ;;  %v4385_v52 = vsel %vm1053_vm5, %v1067_v26, %v1069_v45 }
 0x162   : > { %v966_v53 = vadd.bf16 %v4258_v16, %v942_v47  ;;  %1606 = vmatmul.mubr.bf16.gmra.mrb[28].mxu1 %v980_v18 }
 0x164   : > { %v982_v54 = vmax.bf16 %v5030_v1, %v966_v53 }
 0x165   : > { %v886_v55 = vpop.f32.mrb[40].mxu0 }
 0x166   : > { %v888_v56 = vpop.f32.mrb[41].mxu0  ;;  %v1023_v57 = vrot.slane %v982_v54, 1  ;;  %v1167_v60 = vrot.slane %v982_v54, 4  ;;  %v1119_v61 = vrot.slane %v982_v54, 3  ;;  %v1071_v0 = vrot.slane %v982_v54, 2 }
 0x167   : > { %v889_v2 = vpop.f32.mrb[42].mxu0 }
 0x168   : > { %v943_v3 = vpack.c.bf16 %v889_v2, %v886_v55  ;;  %v891_v4 = vpop.f32.mrb[43].mxu0  ;;  %v1024_v5 = vsel %vm1005_vm2, %v1021_v38, %v1023_v57  ;;  %v1168_v6 = vsel %vm1149_vm3, %v1165_v39, %v1167_v60  ;;  %v4392_v8 = vsel %vm1101_vm4, %v1117_v42, %v1119_v61 }
 0x169   : > { %1613 = vmatprep.mubr.bf16.mxu1 %v1024_v5  ;;  %3561 = vmatprep.mubr.bf16.mxu0 %v1168_v6  ;;  %v4395_v9 = vsel %vm1053_vm5, %v1069_v45, %v1071_v0 }
 0x16a   : > { %v967_v10 = vadd.bf16 %v4258_v16, %v943_v3  ;;  %1614 = vmatmul.mubr.bf16.gmra.mrb[32].mxu1 %v981_v35 }
 0x16c   : > { %v983_v12 = vmax.bf16 %v5030_v1, %v967_v10 }
 0x16d   : > { %v894_v13 = vpop.f32.mrb[44].mxu0 }
 0x16e   : > { %v896_v17 = vpop.f32.mrb[45].mxu0  ;;  %v1025_v18 = vrot.slane %v983_v12, 1  ;;  %v1169_v19 = vrot.slane %v983_v12, 4  ;;  %v1121_v20 = vrot.slane %v983_v12, 3  ;;  %v1073_v23 = vrot.slane %v983_v12, 2 }
 0x16f   : > { %v897_v24 = vpop.f32.mrb[46].mxu0 }
 0x170   : > { %v944_v25 = vpack.c.bf16 %v897_v24, %v894_v13  ;;  %v899_v26 = vpop.f32.mrb[47].mxu0  ;;  %v1026_v27 = vsel %vm1005_vm2, %v1023_v57, %v1025_v18  ;;  %v1170_v28 = vsel %vm1149_vm3, %v1167_v60, %v1169_v19  ;;  %v4402_v29 = vsel %vm1101_vm4, %v1119_v61, %v1121_v20 }
 0x171   : > { %1621 = vmatprep.mubr.bf16.mxu1 %v1026_v27  ;;  %3562 = vmatmul.mubr.bf16.gmra.mrb[80].mxu0 %v1170_v28  ;;  %v4405_v30 = vsel %vm1053_vm5, %v1071_v0, %v1073_v23 }
 0x172   : > { %v968_v31 = vadd.bf16 %v4258_v16, %v944_v25  ;;  %1622 = vmatmul.mubr.bf16.gmra.mrb[36].mxu1 %v982_v54 }
 0x174   : > { %v984_v34 = vmax.bf16 %v5030_v1, %v968_v31 }
 0x175   : > { %v902_v35 = vpop.f32.mrb[48].mxu0 }
 0x176   : > { %v904_v36 = vpop.f32.mrb[49].mxu0  ;;  %v1027_v37 = vrot.slane %v984_v34, 1  ;;  %v1171_v38 = vrot.slane %v984_v34, 4  ;;  %v1123_v39 = vrot.slane %v984_v34, 3  ;;  %v1075_v42 = vrot.slane %v984_v34, 2 }
 0x177   : > { %v905_v45 = vpop.f32.mrb[50].mxu0 }
 0x178   : > { %v945_v46 = vpack.c.bf16 %v905_v45, %v902_v35  ;;  %v907_v47 = vpop.f32.mrb[51].mxu0  ;;  %v1028_v48 = vsel %vm1005_vm2, %v1025_v18, %v1027_v37  ;;  %v1172_v49 = vsel %vm1149_vm3, %v1169_v19, %v1171_v38  ;;  %v4412_v50 = vsel %vm1101_vm4, %v1121_v20, %v1123_v39 }
 0x179   : > { %1629 = vmatprep.mubr.bf16.mxu1 %v1028_v48  ;;  %3565 = vmatprep.mubr.bf16.mxu0 %v1172_v49  ;;  %v4415_v53 = vsel %vm1053_vm5, %v1073_v23, %v1075_v42 }
 0x17a   : > { %v969_v54 = vadd.bf16 %v4258_v16, %v945_v46  ;;  %1630 = vmatmul.mubr.bf16.gmra.mrb[40].mxu1 %v983_v12 }
 0x17c   : > { %v985_v55 = vmax.bf16 %v5030_v1, %v969_v54 }
 0x17d   : > { %v910_v56 = vpop.f32.mrb[52].mxu0 }
 0x17e   : > { %v912_v57 = vpop.f32.mrb[53].mxu0  ;;  %v1029_v60 = vrot.slane %v985_v55, 1  ;;  %v1173_v61 = vrot.slane %v985_v55, 4  ;;  %v1125_v0 = vrot.slane %v985_v55, 3  ;;  %v1077_v2 = vrot.slane %v985_v55, 2 }
 0x17f   : > { %v913_v3 = vpop.f32.mrb[54].mxu0 }
 0x180   : > { %v946_v4 = vpack.c.bf16 %v913_v3, %v910_v56  ;;  %v915_v5 = vpop.f32.mrb[55].mxu0  ;;  %v1030_v6 = vsel %vm1005_vm2, %v1027_v37, %v1029_v60  ;;  %v1174_v10 = vsel %vm1149_vm3, %v1171_v38, %v1173_v61  ;;  %v4422_v13 = vsel %vm1101_vm4, %v1123_v39, %v1125_v0 }
 0x181   : > { %1637 = vmatprep.mubr.bf16.mxu1 %v1030_v6  ;;  %3566 = vmatmul.mubr.bf16.gmra.mrb[84].mxu0 %v1174_v10  ;;  %v4425_v12 = vsel %vm1053_vm5, %v1075_v42, %v1077_v2 }
 0x182   : > { %v970_v17 = vadd.bf16 %v4258_v16, %v946_v4  ;;  %1638 = vmatmul.mubr.bf16.gmra.mrb[44].mxu1 %v984_v34 }
 0x184   : > { %v986_v18 = vmax.bf16 %v5030_v1, %v970_v17 }
 0x185   : > { %v918_v19 = vpop.f32.mrb[56].mxu0 }
 0x186   : > { %v920_v20 = vpop.f32.mrb[57].mxu0  ;;  %v1031_v23 = vrot.slane %v986_v18, 1  ;;  %v1175_v24 = vrot.slane %v986_v18, 4  ;;  %v1127_v25 = vrot.slane %v986_v18, 3  ;;  %v1079_v26 = vrot.slane %v986_v18, 2 }
 0x187   : > { %v921_v27 = vpop.f32.mrb[58].mxu0 }
 0x188   : > { %v947_v28 = vpack.c.bf16 %v921_v27, %v918_v19  ;;  %v923_v31 = vpop.f32.mrb[59].mxu0  ;;  %v1032_v35 = vsel %vm1005_vm2, %v1029_v60, %v1031_v23  ;;  %v1176_v36 = vsel %vm1149_vm3, %v1173_v61, %v1175_v24  ;;  %v4432_v37 = vsel %vm1101_vm4, %v1125_v0, %v1127_v25 }
 0x189   : > { %1645 = vmatprep.mubr.bf16.mxu1 %v1032_v35  ;;  %3569 = vmatprep.mubr.bf16.mxu0 %v1176_v36  ;;  %v4435_v34 = vsel %vm1053_vm5, %v1077_v2, %v1079_v26 }
 0x18a   : > { %v971_v38 = vadd.bf16 %v4258_v16, %v947_v28  ;;  %1646 = vmatmul.mubr.bf16.gmra.mrb[48].mxu1 %v985_v55 }
 0x18c   : > { %v987_v39 = vmax.bf16 %v5030_v1, %v971_v38 }
 0x18d   : > { %v926_v42 = vpop.f32.mrb[60].mxu0 }
 0x18e   : > { %v928_v45 = vpop.f32.mrb[61].mxu0  ;;  %v1033_v46 = vrot.slane %v987_v39, 1  ;;  %v1177_v47 = vrot.slane %v987_v39, 4  ;;  %v1129_v48 = vrot.slane %v987_v39, 3  ;;  %v1081_v49 = vrot.slane %v987_v39, 2 }
 0x18f   : > { %v929_v54 = vpop.f32.mrb[62].mxu0 }
 0x190   : > { %v948_v56 = vpack.c.bf16 %v929_v54, %v926_v42  ;;  %v931_v57 = vpop.f32.mrb[63].mxu0  ;;  %v1034_v60 = vsel %vm1005_vm2, %v1031_v23, %v1033_v46  ;;  %v1178_v61 = vsel %vm1149_vm3, %v1175_v24, %v1177_v47  ;;  %v4442_v0 = vsel %vm1101_vm4, %v1127_v25, %v1129_v48 }
 0x191   : > { %1653 = vmatprep.mubr.bf16.mxu1 %v1034_v60  ;;  %3570 = vmatmul.mubr.bf16.gmra.mrb[88].mxu0 %v1178_v61  ;;  %v4445_v55 = vsel %vm1053_vm5, %v1079_v26, %v1081_v49  ;;  %v3844_v26 = vld [vmem:[%s5017_s5 + $0x38] sm:$0xff]  }
 0x192   : > { %v972_v2 = vadd.bf16 %v4258_v16, %v948_v56  ;;  %1654 = vmatmul.mubr.bf16.gmra.mrb[52].mxu1 %v986_v18 }
 0x194   : > { %v4449_v3 = vmax.bf16 %v5030_v1, %v972_v2 }
 0x196   : > { %v1035_v4 = vrot.slane %v4449_v3, 1  ;;  %v1179_v5 = vrot.slane %v4449_v3, 4  ;;  %v1131_v6 = vrot.slane %v4449_v3, 3  ;;  %v1083_v10 = vrot.slane %v4449_v3, 2 }
 0x198   : > { %v1036_v17 = vsel %vm1005_vm2, %v1033_v46, %v1035_v4  ;;  %v1180_v19 = vsel %vm1149_vm3, %v1177_v47, %v1179_v5  ;;  %v4460_v16 = vsel %vm1101_vm4, %v1129_v48, %v1131_v6  ;;  %v4465_v18 = vsel %vm1053_vm5, %v1081_v49, %v1083_v10 }
 0x199   : > { %1661 = vmatprep.mubr.bf16.mxu1 %v1036_v17  ;;  %3573 = vmatprep.mubr.bf16.mxu0 %v1180_v19 }
 0x19a   : > { %1662 = vmatmul.mubr.bf16.gmra.mrb[56].mxu1 %v987_v39  ;;  %3574 = vmatmul.mubr.bf16.gmra.mrb[92].mxu0 %v1179_v5 }
 0x19b   : > { %1669 = vmatprep.mubr.bf16.mxu1 %v1035_v4 }
 0x1a2   : > { %1670 = vmatmul.mubr.bf16.gmra.mrb[60].mxu1 %v4449_v3 }
 0x1a3   : > { %1709 = vmatprep.mubr.bf16.mxu1 %v4273_v43  ;;  %v3837_v43 = vld [vmem:[%s5017_s5] sm:$0xff]  }
 0x1a4   : > { %3577 = vmatprep.subr.bf16.mxu0 %v3837_v43 }
 0x1a5   : > { %3578 = vmatpush3.bf16.msra.mxu0 %v3837_v43 }
 0x1aa   : > { %1710 = vmatmul.mubr.bf16.vlgmr.msra.gmra.mrb[64].mxu1 %v4276_v44  ;;  %v3838_v44 = vld [vmem:[%s5017_s5 + $0x8] sm:$0xff]  }
 0x1ab   : > { %1717 = vmatprep.mubr.bf16.mxu1 %v4295_v62  ;;  %3579 = vmatprep.subr.bf16.mxu0 %v3838_v44  ;;  %v3839_v62 = vld [vmem:[%s5017_s5 + $0x10] sm:$0xff]  }
 0x1ac   : > { %3580 = vmatpush3.bf16.msra.mxu0 %v3838_v44 }
 0x1ad   : > { %3581 = vmatprep.subr.bf16.mxu0 %v3839_v62 }
 0x1b0   : > { %3582 = vmatpush3.bf16.msra.mxu0 %v3839_v62 }
 0x1b2   : > { %1718 = vmatmul.mubr.bf16.gmra.mrb[68].mxu1 %v4298_v63 }
 0x1b3   : > { %1725 = vmatprep.mubr.bf16.mxu1 %v4317_v21 }
 0x1ba   : > { %1726 = vmatmul.mubr.bf16.gmra.mrb[72].mxu1 %v4320_v22 }
 0x1bb   : > { %1733 = vmatprep.mubr.bf16.mxu1 %v4339_v40 }
 0x1c2   : > { %1734 = vmatmul.mubr.bf16.gmra.mrb[76].mxu1 %v4342_v41 }
 0x1c3   : > { %1741 = vmatprep.mubr.bf16.mxu1 %v4352_v58  ;;  %v3840_v58 = vld [vmem:[%s5017_s5 + $0x18] sm:$0xff]  }
 0x1c4   : > { %3583 = vmatprep.subr.bf16.mxu0 %v3840_v58 }
 0x1c5   : > { %3584 = vmatpush3.bf16.msra.mxu0 %v3840_v58 }
 0x1ca   : > { %1742 = vmatmul.mubr.bf16.gmra.mrb[80].mxu1 %v4355_v59 }
 0x1cb   : > { %1749 = vmatprep.mubr.bf16.mxu1 %v4362_v14 }
 0x1d2   : > { %1750 = vmatmul.mubr.bf16.gmra.mrb[84].mxu1 %v4365_v15  ;;  %v3841_v15 = vld [vmem:[%s5017_s5 + $0x20] sm:$0xff]  }
 0x1d3   : > { %1757 = vmatprep.mubr.bf16.mxu1 %v4372_v32  ;;  %3585 = vmatprep.subr.bf16.mxu0 %v3841_v15 }
 0x1d4   : > { %3586 = vmatpush3.bf16.msra.mxu0 %v3841_v15 }
 0x1da   : > { %1758 = vmatmul.mubr.bf16.gmra.mrb[88].mxu1 %v4375_v33 }
 0x1db   : > { %1765 = vmatprep.mubr.bf16.mxu1 %v4382_v51 }
 0x1e2   : > { %1766 = vmatmul.mubr.bf16.gmra.mrb[92].mxu1 %v4385_v52 }
 0x1e3   : > { %1773 = vmatprep.mubr.bf16.mxu1 %v4392_v8 }
 0x1ea   : > { %1774 = vmatmul.mubr.bf16.gmra.mrb[96].mxu1 %v4395_v9 }
 0x1eb   : > { %1781 = vmatprep.mubr.bf16.mxu1 %v4402_v29 }
 0x1f2   : > { %1782 = vmatmul.mubr.bf16.gmra.mrb[100].mxu1 %v4405_v30 }
 0x1f3   : > { %1789 = vmatprep.mubr.bf16.mxu1 %v4412_v50  ;;  %v3842_v50 = vld [vmem:[%s5017_s5 + $0x28] sm:$0xff]  }
 0x1f4   : > { %3587 = vmatprep.subr.bf16.mxu0 %v3842_v50 }
 0x1f5   : > { %3588 = vmatpush3.bf16.msra.mxu0 %v3842_v50 }
 0x1fa   : > { %1790 = vmatmul.mubr.bf16.gmra.mrb[104].mxu1 %v4415_v53 }
 0x1fb   : > { %1797 = vmatprep.mubr.bf16.mxu1 %v4422_v13  ;;  %v3843_v13 = vld [vmem:[%s5017_s5 + $0x30] sm:$0xff]  }
 0x1fc   : > { %3589 = vmatprep.subr.bf16.mxu0 %v3843_v13 }
 0x1fd   : > { %v3241_v63 = vpop.f32.mrb[0].mxu1  ;;  %3590 = vmatpush3.bf16.msra.mxu0 %v3843_v13 }
 0x1fe   : > { %v3242_v21 = vpop.f32.mrb[1].mxu1  ;;  %3591 = vmatprep.subr.bf16.mxu0 %v3844_v26 }
 0x1ff   : > { %v4500_v22 = vadd.f32 %v3242_v21, %v3241_v63  ;;  %v3244_v40 = vpop.f32.mrb[2].mxu1 }
 0x200   : > { %v3245_v41 = vpop.f32.mrb[3].mxu1 }
 0x201   : > { %v4505_v59 = vadd.f32 %v3245_v41, %v3244_v40  ;;  %3592 = vmatpush3.bf16.msra.mxu0 %v3844_v26 }
 0x202   : > { %1798 = vmatmul.mubr.bf16.gmra.mrb[108].mxu1 %v4425_v12 }
 0x203   : > { %1805 = vmatprep.mubr.bf16.mxu1 %v4432_v37 }
 0x204   : > { %v4509_v14 = vpop.f32.mrb[64].mxu0 }
 0x205   : > { %v3247_v32 = vpop.f32.mrb[4].mxu1  ;;  %v4514_v33 = vpop.f32.mrb[65].mxu0 }
 0x206   : > { %v3248_v51 = vpop.f32.mrb[5].mxu1  ;;  %v4516_v52 = vpop.f32.mrb[66].mxu0 }
 0x207   : > { %v4518_v8 = vadd.f32 %v3248_v51, %v3247_v32  ;;  %v3250_v9 = vpop.f32.mrb[6].mxu1  ;;  %v4520_v29 = vpop.f32.mrb[67].mxu0 }
 0x208   : > { %v3251_v30 = vpop.f32.mrb[7].mxu1 }
 0x209   : > { %v4525_v53 = vadd.f32 %v3251_v30, %v3250_v9 }
 0x20a   : > { %1806 = vmatmul.mubr.bf16.gmra.mrb[112].mxu1 %v4435_v34 }
 0x20b   : > { %1813 = vmatprep.mubr.bf16.mxu1 %v4442_v0 }
 0x20d   : > { %v3253_v12 = vpop.f32.mrb[8].mxu1 }
 0x20e   : > { %v3254_v20 = vpop.f32.mrb[9].mxu1 }
 0x20f   : > { %v4532_v23 = vadd.f32 %v3254_v20, %v3253_v12  ;;  %v3256_v24 = vpop.f32.mrb[10].mxu1 }
 0x210   : > { %v3257_v25 = vpop.f32.mrb[11].mxu1 }
 0x211   : > { %v4537_v27 = vadd.f32 %v3257_v25, %v3256_v24 }
 0x212   : > { %1814 = vmatmul.mubr.bf16.gmra.mrb[116].mxu1 %v4445_v55 }
 0x213   : > { %1821 = vmatprep.mubr.bf16.mxu1 %v4460_v16 }
 0x214   : > { %v4541_v28 = vpop.f32.mrb[68].mxu0 }
 0x215   : > { %v3259_v31 = vpop.f32.mrb[12].mxu1  ;;  %v4543_v35 = vpop.f32.mrb[69].mxu0 }
 0x216   : > { %v3260_v36 = vpop.f32.mrb[13].mxu1  ;;  %v4545_v37 = vpop.f32.mrb[70].mxu0 }
 0x217   : > { %v4547_v34 = vadd.f32 %v3260_v36, %v3259_v31  ;;  %v3262_v38 = vpop.f32.mrb[14].mxu1  ;;  %v4549_v39 = vpop.f32.mrb[71].mxu0 }
 0x218   : > { %v3263_v42 = vpop.f32.mrb[15].mxu1 }
 0x219   : > { %v4551_v45 = vadd.f32 %v3263_v42, %v3262_v38 }
 0x21a   : > { %1822 = vmatmul.mubr.bf16.gmra.mrb[120].mxu1 %v4465_v18 }
 0x21b   : > { %1829 = vmatprep.mubr.bf16.mxu1 %v1131_v6 }
 0x21d   : > { %v3265_v46 = vpop.f32.mrb[16].mxu1 }
 0x21e   : > { %v3266_v47 = vpop.f32.mrb[17].mxu1 }
 0x21f   : > { %v4556_v48 = vadd.f32 %v3266_v47, %v3265_v46  ;;  %v3268_v49 = vpop.f32.mrb[18].mxu1 }
 0x220   : > { %v3269_v54 = vpop.f32.mrb[19].mxu1 }
 0x221   : > { %v4558_v56 = vadd.f32 %v3269_v54, %v3268_v49 }
 0x222   : > { %1830 = vmatmul.mubr.bf16.gmra.mrb[124].mxu1 %v1083_v10 }
 0x224   : > { %v4562_v57 = vpop.f32.mrb[72].mxu0 }
 0x225   : > { %v3271_v60 = vpop.f32.mrb[20].mxu1  ;;  %v4564_v61 = vpop.f32.mrb[73].mxu0 }
 0x226   : > { %v3272_v0 = vpop.f32.mrb[21].mxu1  ;;  %v4566_v55 = vpop.f32.mrb[74].mxu0 }
 0x227   : > { %v4568_v2 = vadd.f32 %v3272_v0, %v3271_v60  ;;  %v3274_v4 = vpop.f32.mrb[22].mxu1  ;;  %v4570_v5 = vpop.f32.mrb[75].mxu0 }
 0x228   : > { %v3275_v6 = vpop.f32.mrb[23].mxu1 }
 0x229   : > { %v4572_v17 = vadd.f32 %v3275_v6, %v3274_v4 }
 0x22d   : > { %v3277_v19 = vpop.f32.mrb[24].mxu1 }
 0x22e   : > { %v3278_v16 = vpop.f32.mrb[25].mxu1 }
 0x22f   : > { %v4574_v3 = vadd.f32 %v3278_v16, %v3277_v19  ;;  %v3280_v10 = vpop.f32.mrb[26].mxu1 }
 0x230   : > { %v3281_v18 = vpop.f32.mrb[27].mxu1 }
 0x231   : > { %v4576_v43 = vadd.f32 %v3281_v18, %v3280_v10 }
 0x234   : > { %v4578_v44 = vpop.f32.mrb[76].mxu0 }
 0x235   : > { %v3283_v62 = vpop.f32.mrb[28].mxu1  ;;  %v4580_v63 = vpop.f32.mrb[77].mxu0 }
 0x236   : > { %v3284_v21 = vpop.f32.mrb[29].mxu1  ;;  %v4582_v40 = vpop.f32.mrb[78].mxu0 }
 0x237   : > { %v4584_v41 = vadd.f32 %v3284_v21, %v3283_v62  ;;  %v3286_v58 = vpop.f32.mrb[30].mxu1  ;;  %v4586_v15 = vpop.f32.mrb[79].mxu0 }
 0x238   : > { %v3287_v32 = vpop.f32.mrb[31].mxu1 }
 0x239   : > { %v4588_v51 = vadd.f32 %v3287_v32, %v3286_v58 }
 0x23d   : > { %v3289_v9 = vpop.f32.mrb[32].mxu1 }
 0x23e   : > { %v3290_v30 = vpop.f32.mrb[33].mxu1 }
 0x23f   : > { %v4590_v50 = vadd.f32 %v3290_v30, %v3289_v9  ;;  %v3292_v13 = vpop.f32.mrb[34].mxu1 }
 0x240   : > { %v3293_v12 = vpop.f32.mrb[35].mxu1 }
 0x241   : > { %v4592_v20 = vadd.f32 %v3293_v12, %v3292_v13 }
 0x244   : > { %v4594_v24 = vpop.f32.mrb[80].mxu0 }
 0x245   : > { %v3295_v25 = vpop.f32.mrb[36].mxu1  ;;  %v4596_v26 = vpop.f32.mrb[81].mxu0 }
 0x246   : > { %v3296_v31 = vpop.f32.mrb[37].mxu1  ;;  %v4598_v36 = vpop.f32.mrb[82].mxu0 }
 0x247   : > { %v4600_v38 = vadd.f32 %v3296_v31, %v3295_v25  ;;  %v3298_v42 = vpop.f32.mrb[38].mxu1  ;;  %v4602_v46 = vpop.f32.mrb[83].mxu0 }
 0x248   : > { %v3299_v47 = vpop.f32.mrb[39].mxu1 }
 0x249   : > { %v4604_v49 = vadd.f32 %v3299_v47, %v3298_v42 }
 0x24d   : > { %v3301_v54 = vpop.f32.mrb[40].mxu1 }
 0x24e   : > { %v3302_v60 = vpop.f32.mrb[41].mxu1 }
 0x24f   : > { %v4606_v0 = vadd.f32 %v3302_v60, %v3301_v54  ;;  %v3304_v4 = vpop.f32.mrb[42].mxu1 }
 0x250   : > { %v3305_v6 = vpop.f32.mrb[43].mxu1 }
 0x251   : > { %v4608_v19 = vadd.f32 %v3305_v6, %v3304_v4 }
 0x254   : > { %v4610_v16 = vpop.f32.mrb[84].mxu0 }
 0x255   : > { %5040 = vst [vmem:[#allocation10_spill] sm:$0xff] %v4610_v16  ;;  %v3307_v10 = vpop.f32.mrb[44].mxu1  ;;  %v4612_v18 = vpop.f32.mrb[85].mxu0 }
 0x256   : > { %v3308_v62 = vpop.f32.mrb[45].mxu1  ;;  %v4614_v21 = vpop.f32.mrb[86].mxu0 }
 0x257   : > { %5041 = vst [vmem:[#allocation11_spill] sm:$0xff] %v4614_v21  ;;  %v4616_v58 = vadd.f32 %v3308_v62, %v3307_v10  ;;  %v3310_v32 = vpop.f32.mrb[46].mxu1  ;;  %v4618_v9 = vpop.f32.mrb[87].mxu0 }
 0x258   : > { %v3311_v30 = vpop.f32.mrb[47].mxu1 }
 0x259   : > { %v4620_v13 = vadd.f32 %v3311_v30, %v3310_v32 }
 0x25b   : > { %5042 = vst [vmem:[#allocation12_spill] sm:$0xff] %v4620_v13 }
 0x25d   : > { %v3313_v12 = vpop.f32.mrb[48].mxu1 }
 0x25e   : > { %v3314_v25 = vpop.f32.mrb[49].mxu1 }
 0x25f   : > { %v4622_v31 = vadd.f32 %v3314_v25, %v3313_v12  ;;  %v3316_v42 = vpop.f32.mrb[50].mxu1 }
 0x260   : > { %v3317_v47 = vpop.f32.mrb[51].mxu1 }
 0x261   : > { %5043 = vst [vmem:[#allocation13_spill] sm:$0xff] %v4622_v31  ;;  %v4624_v54 = vadd.f32 %v3317_v47, %v3316_v42 }
 0x263   : > { %5044 = vst [vmem:[#allocation14_spill] sm:$0xff] %v4624_v54 }
 0x264   : > { %v4626_v60 = vpop.f32.mrb[88].mxu0 }
 0x265   : > { %5045 = vst [vmem:[#allocation15_spill] sm:$0xff] %v4626_v60  ;;  %v3319_v4 = vpop.f32.mrb[52].mxu1  ;;  %v4628_v6 = vpop.f32.mrb[89].mxu0 }
 0x266   : > { %5046 = vst [vmem:[#allocation16_spill] sm:$0xff] %v4628_v6  ;;  %v3320_v10 = vpop.f32.mrb[53].mxu1  ;;  %v4630_v62 = vpop.f32.mrb[90].mxu0 }
 0x267   : > { %5047 = vst [vmem:[#allocation17_spill] sm:$0xff] %v4630_v62  ;;  %v4632_v1 = vadd.f32 %v3320_v10, %v3319_v4  ;;  %v3322_v32 = vpop.f32.mrb[54].mxu1  ;;  %v4634_v30 = vpop.f32.mrb[91].mxu0 }
 0x268   : > { %5049 = vst [vmem:[#allocation19_spill] sm:$0xff] %v4634_v30  ;;  %v3323_v11 = vpop.f32.mrb[55].mxu1 }
 0x269   : > { %5048 = vst [vmem:[#allocation18_spill] sm:$0xff] %v4632_v1  ;;  %v4636_v12 = vadd.f32 %v3323_v11, %v3322_v32 }
 0x26b   : > { %5050 = vst [vmem:[#allocation20_spill] sm:$0xff] %v4636_v12 }
 0x26d   : > { %v3325_v25 = vpop.f32.mrb[56].mxu1  ;;  %v4638_v31 = vpop.f32.mrb[92].mxu0 }
 0x26e   : > { %5051 = vst [vmem:[#allocation21_spill] sm:$0xff] %v4638_v31  ;;  %v3326_v42 = vpop.f32.mrb[57].mxu1  ;;  %v4640_v47 = vpop.f32.mrb[93].mxu0  ;;  %v2013_v31 = vld [vmem:[%s5016_s4] sm:$0x1] }
 0x26f   : > { %5052 = vst [vmem:[#allocation22_spill] sm:$0xff] %v4640_v47  ;;  %v4642_v60 = vadd.f32 %v3326_v42, %v3325_v25  ;;  %v3328_v54 = vpop.f32.mrb[58].mxu1  ;;  %v3576_v6 = vpop.f32.mrb[94].mxu0 }
 0x270   : > { %v3329_v21 = vpop.f32.mrb[59].mxu1  ;;  %v4644_v62 = vpop.f32.mrb[95].mxu0 }
 0x271   : > { %5053 = vst [vmem:[#allocation23_spill] sm:$0xff] %v4642_v60  ;;  %5054 = vst [vmem:[#allocation24_spill] sm:$0xff] %v4644_v62  ;;  %v4646_v4 = vadd.f32 %v3329_v21, %v3328_v54  ;;  %v2015_v60 = vpack.i.b16 %v2013_v31, %v2013_v31 }
 0x273   : > { %5055 = vst [vmem:[#allocation25_spill] sm:$0xff] %v4646_v4 }
 0x275   : > { %v3331_v10 = vpop.f32.mrb[60].mxu1 }
 0x276   : > { %v3332_v1 = vpop.f32.mrb[61].mxu1 }
 0x277   : > { %v4648_v30 = vadd.f32 %v3332_v1, %v3331_v10  ;;  %v3334_v11 = vpop.f32.mrb[62].mxu1  ;;  %v5057_v10 = vsub.s32 0, %v4250_v7  ;;  %v5058_v7 = vmov 0  }
 0x278   : > { %v3335_v32 = vpop.f32.mrb[63].mxu1 }
 0x279   : > { %5056 = vst [vmem:[#allocation26_spill] sm:$0xff] %v4648_v30  ;;  %v4658_v11 = vrot.slane %v2015_v60, %v5057_v10 }
 0x27d   : > { %v3353_v12 = vpop.f32.mrb[64].mxu1 }
 0x27e   : > { %v3354_v25 = vpop.f32.mrb[65].mxu1 }
 0x27f   : > { %v3355_v42 = vadd.f32 %v3354_v25, %v3353_v12  ;;  %v3356_v47 = vpop.f32.mrb[66].mxu1 }
 0x280   : > { %v3357_v6 = vpop.f32.mrb[67].mxu1 }
 0x281   : > { %v1712_v62 = vadd.f32 %v3355_v42, %v4500_v22  ;;  %v3358_v21 = vadd.f32 %v3357_v6, %v3356_v47 }
 0x283   : > { %v1872_v54 = vadd.f32 %v4514_v33, %v1712_v62  ;;  %v1715_v1 = vadd.f32 %v3358_v21, %v4505_v59 }
 0x285   : > { %v1875_v32 = vadd.f32 %v4520_v29, %v1715_v1  ;;  %v3359_v30 = vpop.f32.mrb[68].mxu1 }
 0x286   : > { %v3360_v4 = vpop.f32.mrb[69].mxu1 }
 0x287   : > { %v1997_v13 = vpack.c.bf16 %v1875_v32, %v1872_v54  ;;  %v3361_v12 = vadd.f32 %v3360_v4, %v3359_v30  ;;  %v3362_v25 = vpop.f32.mrb[70].mxu1 }
 0x288   : > { %v3363_v16 = vpop.f32.mrb[71].mxu1 }
 0x289   : > { %v1720_v31 = vadd.f32 %v3361_v12, %v4518_v8  ;;  %v3364_v22 = vadd.f32 %v3363_v16, %v3362_v25  ;;  %v2021_v47 = vadd.bf16 %v4658_v11, %v1997_v13 }
 0x28b   : > { %v1880_v33 = vadd.f32 %v4509_v14, %v1720_v31  ;;  %v1723_v59 = vadd.f32 %v3364_v22, %v4525_v53  ;;  %v2037_v60 = vmax.bf16 %v5058_v7, %v2021_v47 }
 0x28d   : > { %v1883_v62 = vadd.f32 %v4516_v52, %v1723_v59  ;;  %v3365_v29 = vpop.f32.mrb[72].mxu1  ;;  %3593 = vmatprep.mubr.bf16.mxu0 %v2037_v60 }
 0x28e   : > { %v3366_v42 = vpop.f32.mrb[73].mxu1 }
 0x28f   : > { %v1998_v6 = vpack.c.bf16 %v1883_v62, %v1880_v33  ;;  %v3367_v30 = vadd.f32 %v3366_v42, %v3365_v29  ;;  %v3368_v4 = vpop.f32.mrb[74].mxu1 }
 0x290   : > { %v3369_v21 = vpop.f32.mrb[75].mxu1 }
 0x291   : > { %v2022_v8 = vadd.bf16 %v4658_v11, %v1998_v6  ;;  %v1728_v16 = vadd.f32 %v3367_v30, %v4532_v23  ;;  %v3370_v13 = vadd.f32 %v3369_v21, %v3368_v4 }
 0x293   : > { %v2038_v14 = vmax.bf16 %v5058_v7, %v2022_v8  ;;  %v1888_v53 = vadd.f32 %v4543_v35, %v1728_v16  ;;  %v1731_v54 = vadd.f32 %v3370_v13, %v4537_v27 }
 0x295   : > { %v1891_v52 = vadd.f32 %v4549_v39, %v1731_v54  ;;  %v3371_v1 = vpop.f32.mrb[76].mxu1  ;;  %3594 = vmatmul.mubr.bf16.vlgmr.msra.gmra.mrb[96].mxu0 %v2038_v14 }
 0x296   : > { %v3372_v10 = vpop.f32.mrb[77].mxu1 }
 0x297   : > { %v1999_v32 = vpack.c.bf16 %v1891_v52, %v1888_v53  ;;  %v3373_v12 = vadd.f32 %v3372_v10, %v3371_v1  ;;  %v3374_v25 = vpop.f32.mrb[78].mxu1 }
 0x298   : > { %v3375_v31 = vpop.f32.mrb[79].mxu1 }
 0x299   : > { %v1736_v22 = vadd.f32 %v3373_v12, %v4547_v34  ;;  %v3376_v47 = vadd.f32 %v3375_v31, %v3374_v25  ;;  %v2023_v23 = vadd.bf16 %v4658_v11, %v1999_v32 }
 0x29b   : > { %v1896_v33 = vadd.f32 %v4541_v28, %v1736_v22  ;;  %v1739_v35 = vadd.f32 %v3376_v47, %v4551_v45  ;;  %v2039_v27 = vmax.bf16 %v5058_v7, %v2023_v23 }
 0x29d   : > { %v1899_v39 = vadd.f32 %v4545_v37, %v1739_v35  ;;  %v3377_v59 = vpop.f32.mrb[80].mxu1  ;;  %3597 = vmatprep.mubr.bf16.mxu0 %v2039_v27 }
 0x29e   : > { %v3378_v60 = vpop.f32.mrb[81].mxu1 }
 0x29f   : > { %v2000_v62 = vpack.c.bf16 %v1899_v39, %v1896_v33  ;;  %v3379_v29 = vadd.f32 %v3378_v60, %v3377_v59  ;;  %v3380_v42 = vpop.f32.mrb[82].mxu1 }
 0x2a0   : > { %v3381_v6 = vpop.f32.mrb[83].mxu1 }
 0x2a1   : > { %v1744_v34 = vadd.f32 %v3379_v29, %v4556_v48  ;;  %v3382_v30 = vadd.f32 %v3381_v6, %v3380_v42  ;;  %v2024_v4 = vadd.bf16 %v4658_v11, %v2000_v62 }
 0x2a3   : > { %v1904_v28 = vadd.f32 %v4564_v61, %v1744_v34  ;;  %v1747_v45 = vadd.f32 %v3382_v30, %v4558_v56  ;;  %v2040_v21 = vmax.bf16 %v5058_v7, %v2024_v4 }
 0x2a5   : > { %v1907_v37 = vadd.f32 %v4570_v5, %v1747_v45  ;;  %v3383_v8 = vpop.f32.mrb[84].mxu1  ;;  %3598 = vmatmul.mubr.bf16.gmra.mrb[100].mxu0 %v2040_v21 }
 0x2a6   : > { %v3384_v16 = vpop.f32.mrb[85].mxu1 }
 0x2a7   : > { %v2001_v13 = vpack.c.bf16 %v1907_v37, %v1904_v28  ;;  %v3385_v14 = vadd.f32 %v3384_v16, %v3383_v8  ;;  %v3386_v53 = vpop.f32.mrb[86].mxu1 }
 0x2a8   : > { %v3387_v54 = vpop.f32.mrb[87].mxu1 }
 0x2a9   : > { %v1752_v48 = vadd.f32 %v3385_v14, %v4568_v2  ;;  %v3388_v52 = vadd.f32 %v3387_v54, %v3386_v53  ;;  %v2025_v1 = vadd.bf16 %v4658_v11, %v2001_v13 }
 0x2ab   : > { %v1912_v61 = vadd.f32 %v4562_v57, %v1752_v48  ;;  %v1755_v56 = vadd.f32 %v3388_v52, %v4572_v17  ;;  %v2041_v10 = vmax.bf16 %v5058_v7, %v2025_v1 }
 0x2ad   : > { %v1915_v5 = vadd.f32 %v4566_v55, %v1755_v56  ;;  %v3389_v32 = vpop.f32.mrb[88].mxu1  ;;  %3601 = vmatprep.mubr.bf16.mxu0 %v2041_v10 }
 0x2ae   : > { %v3390_v12 = vpop.f32.mrb[89].mxu1 }
 0x2af   : > { %v2002_v25 = vpack.c.bf16 %v1915_v5, %v1912_v61  ;;  %v3391_v31 = vadd.f32 %v3390_v12, %v3389_v32  ;;  %v3392_v22 = vpop.f32.mrb[90].mxu1 }
 0x2b0   : > { %v3393_v47 = vpop.f32.mrb[91].mxu1 }
 0x2b1   : > { %v1760_v2 = vadd.f32 %v3391_v31, %v4574_v3  ;;  %v3394_v23 = vadd.f32 %v3393_v47, %v3392_v22  ;;  %v2026_v33 = vadd.bf16 %v4658_v11, %v2002_v25 }
 0x2b3   : > { %v1920_v57 = vadd.f32 %v4580_v63, %v1760_v2  ;;  %v1763_v17 = vadd.f32 %v3394_v23, %v4576_v43  ;;  %v2042_v35 = vmax.bf16 %v5058_v7, %v2026_v33 }
 0x2b5   : > { %v1923_v55 = vadd.f32 %v4586_v15, %v1763_v17  ;;  %v3395_v27 = vpop.f32.mrb[92].mxu1  ;;  %3602 = vmatmul.mubr.bf16.gmra.mrb[104].mxu0 %v2042_v35 }
 0x2b6   : > { %v3396_v39 = vpop.f32.mrb[93].mxu1 }
 0x2b7   : > { %v2003_v59 = vpack.c.bf16 %v1923_v55, %v1920_v57  ;;  %v3397_v60 = vadd.f32 %v3396_v39, %v3395_v27  ;;  %v3398_v62 = vpop.f32.mrb[94].mxu1 }
 0x2b8   : > { %v3399_v29 = vpop.f32.mrb[95].mxu1 }
 0x2b9   : > { %v1768_v3 = vadd.f32 %v3397_v60, %v4584_v41  ;;  %v3400_v42 = vadd.f32 %v3399_v29, %v3398_v62  ;;  %v2027_v6 = vadd.bf16 %v4658_v11, %v2003_v59  ;;  %v5059_v60 = vld [vmem:[#allocation10_spill] sm:$0xff]  ;;  %v5060_v62 = vld [vmem:[#allocation12_spill] sm:$0xff] }
 0x2bb   : > { %v1928_v63 = vadd.f32 %v4578_v44, %v1768_v3  ;;  %v1771_v43 = vadd.f32 %v3400_v42, %v4588_v51  ;;  %v2043_v34 = vmax.bf16 %v5058_v7, %v2027_v6  ;;  %v5061_v3 = vld [vmem:[#allocation11_spill] sm:$0xff] }
 0x2bd   : > { %v1931_v15 = vadd.f32 %v4582_v40, %v1771_v43  ;;  %v3401_v30 = vpop.f32.mrb[96].mxu1  ;;  %3605 = vmatprep.mubr.bf16.mxu0 %v2043_v34 }
 0x2be   : > { %v3402_v4 = vpop.f32.mrb[97].mxu1 }
 0x2bf   : > { %v2004_v28 = vpack.c.bf16 %v1931_v15, %v1928_v63  ;;  %v3403_v45 = vadd.f32 %v3402_v4, %v3401_v30  ;;  %v3404_v21 = vpop.f32.mrb[98].mxu1  ;;  %v5062_v30 = vld [vmem:[#allocation13_spill] sm:$0xff] }
 0x2c0   : > { %v3405_v37 = vpop.f32.mrb[99].mxu1 }
 0x2c1   : > { %v1776_v41 = vadd.f32 %v3403_v45, %v4590_v50  ;;  %v3406_v8 = vadd.f32 %v3405_v37, %v3404_v21  ;;  %v2028_v16 = vadd.bf16 %v4658_v11, %v2004_v28  ;;  %v5063_v45 = vld [vmem:[#allocation16_spill] sm:$0xff]  ;;  %v5064_v37 = vld [vmem:[#allocation14_spill] sm:$0xff] }
 0x2c3   : > { %v1936_v44 = vadd.f32 %v4596_v26, %v1776_v41  ;;  %v1779_v51 = vadd.f32 %v3406_v8, %v4592_v20  ;;  %v2044_v13 = vmax.bf16 %v5058_v7, %v2028_v16  ;;  %v5065_v16 = vld [vmem:[#allocation19_spill] sm:$0xff] }
 0x2c5   : > { %v1939_v40 = vadd.f32 %v4602_v46, %v1779_v51  ;;  %v3407_v14 = vpop.f32.mrb[100].mxu1  ;;  %3606 = vmatmul.mubr.bf16.gmra.mrb[108].mxu0 %v2044_v13 }
 0x2c6   : > { %v3408_v53 = vpop.f32.mrb[101].mxu1 }
 0x2c7   : > { %v2005_v54 = vpack.c.bf16 %v1939_v40, %v1936_v44  ;;  %v3409_v48 = vadd.f32 %v3408_v53, %v3407_v14  ;;  %v3410_v52 = vpop.f32.mrb[102].mxu1 }
 0x2c8   : > { %v3411_v1 = vpop.f32.mrb[103].mxu1 }
 0x2c9   : > { %v1784_v50 = vadd.f32 %v3409_v48, %v4600_v38  ;;  %v3412_v61 = vadd.f32 %v3411_v1, %v3410_v52  ;;  %v2029_v56 = vadd.bf16 %v4658_v11, %v2005_v54  ;;  %v5066_v48 = vld [vmem:[#allocation18_spill] sm:$0xff] }
 0x2cb   : > { %v1944_v26 = vadd.f32 %v4594_v24, %v1784_v50  ;;  %v1787_v20 = vadd.f32 %v3412_v61, %v4604_v49  ;;  %v2045_v10 = vmax.bf16 %v5058_v7, %v2029_v56  ;;  %v5067_v61 = vld [vmem:[#allocation15_spill] sm:$0xff] }
 0x2cd   : > { %v1947_v46 = vadd.f32 %v4598_v36, %v1787_v20  ;;  %v3413_v5 = vpop.f32.mrb[104].mxu1  ;;  %3609 = vmatprep.mubr.bf16.mxu0 %v2045_v10 }
 0x2ce   : > { %v3414_v32 = vpop.f32.mrb[105].mxu1 }
 0x2cf   : > { %v2006_v12 = vpack.c.bf16 %v1947_v46, %v1944_v26  ;;  %v3415_v25 = vadd.f32 %v3414_v32, %v3413_v5  ;;  %v3416_v31 = vpop.f32.mrb[106].mxu1  ;;  %v5068_v26 = vld [vmem:[#allocation20_spill] sm:$0xff]  ;;  %v5069_v46 = vld [vmem:[#allocation17_spill] sm:$0xff] }
 0x2d0   : > { %v3417_v22 = vpop.f32.mrb[107].mxu1 }
 0x2d1   : > { %v1792_v38 = vadd.f32 %v3415_v25, %v4606_v0  ;;  %v3418_v47 = vadd.f32 %v3417_v22, %v3416_v31  ;;  %v2030_v2 = vadd.bf16 %v4658_v11, %v2006_v12 }
 0x2d3   : > { %v1952_v24 = vadd.f32 %v4612_v18, %v1792_v38  ;;  %v1795_v49 = vadd.f32 %v3418_v47, %v4608_v19  ;;  %v2046_v23 = vmax.bf16 %v5058_v7, %v2030_v2  ;;  %v5070_v47 = vld [vmem:[#allocation23_spill] sm:$0xff] }
 0x2d5   : > { %v1955_v36 = vadd.f32 %v4618_v9, %v1795_v49  ;;  %v3419_v33 = vpop.f32.mrb[108].mxu1  ;;  %3610 = vmatmul.mubr.bf16.gmra.mrb[112].mxu0 %v2046_v23  ;;  %v5071_v23 = vld [vmem:[#allocation22_spill] sm:$0xff] }
 0x2d6   : > { %v3420_v57 = vpop.f32.mrb[109].mxu1 }
 0x2d7   : > { %v2007_v17 = vpack.c.bf16 %v1955_v36, %v1952_v24  ;;  %v3421_v35 = vadd.f32 %v3420_v57, %v3419_v33  ;;  %v3422_v55 = vpop.f32.mrb[110].mxu1  ;;  %v5072_v33 = vld [vmem:[#allocation25_spill] sm:$0xff] }
 0x2d8   : > { %v3423_v27 = vpop.f32.mrb[111].mxu1 }
 0x2d9   : > { %v1800_v0 = vadd.f32 %v3421_v35, %v4616_v58  ;;  %v3424_v39 = vadd.f32 %v3423_v27, %v3422_v55  ;;  %v2031_v59 = vadd.bf16 %v4658_v11, %v2007_v17  ;;  %v5073_v35 = vld [vmem:[#allocation24_spill] sm:$0xff] }
 0x2db   : > { %v1960_v18 = vadd.f32 %v5059_v60, %v1800_v0  ;;  %v1803_v19 = vadd.f32 %v3424_v39, %v5060_v62  ;;  %v2047_v29 = vmax.bf16 %v5058_v7, %v2031_v59  ;;  %v5074_v62 = vld [vmem:[#allocation26_spill] sm:$0xff] }
 0x2dd   : > { %v1963_v9 = vadd.f32 %v5061_v3, %v1803_v19  ;;  %v3425_v42 = vpop.f32.mrb[112].mxu1  ;;  %3613 = vmatprep.mubr.bf16.mxu0 %v2047_v29  ;;  %v5075_v3 = vld [vmem:[#allocation21_spill] sm:$0xff] }
 0x2de   : > { %v3426_v6 = vpop.f32.mrb[113].mxu1 }
 0x2df   : > { %v2008_v63 = vpack.c.bf16 %v1963_v9, %v1960_v18  ;;  %v3427_v43 = vadd.f32 %v3426_v6, %v3425_v42  ;;  %v3428_v34 = vpop.f32.mrb[114].mxu1 }
 0x2e0   : > { %v3429_v15 = vpop.f32.mrb[115].mxu1 }
 0x2e1   : > { %v1808_v58 = vadd.f32 %v3427_v43, %v5062_v30  ;;  %v3430_v4 = vadd.f32 %v3429_v15, %v3428_v34  ;;  %v2032_v28 = vadd.bf16 %v4658_v11, %v2008_v63  ;;  %v3845_v34 = vld [vmem:[%s5020_s8] sm:$0xff]   ;;  %v3954_v15 = vmov 0.0  }
 0x2e2   : > { %3625 = vmatprep.subr.bf16.mxu1 %v3954_v15  ;;  %3645 = vmatprep.subr.bf16.mxu0 %v3954_v15  ;;  %v3849_v30 = vld [vmem:[%s5019_s7] sm:$0xff]  }
 0x2e3   : > { %v1968_v21 = vadd.f32 %v5063_v45, %v1808_v58  ;;  %v1811_v41 = vadd.f32 %v3430_v4, %v5064_v37  ;;  %v2048_v8 = vmax.bf16 %v5058_v7, %v2032_v28  ;;  %3626 = vmatpush3.bf16.msra.mxu1 %v3845_v34  ;;  %3646 = vmatpush3.bf16.msra.mxu0 %v3849_v30  ;;  %v4771_v58 = vld [vmem:[%s5018_s6] ss:$0 sm:$0xff]  ;;  %v3853_v28 = vld [vmem:[%s5019_s7 + $0x18] sm:$0xff]   ;;  %v3846_v37 = vld [vmem:[%s5020_s8 + $0x8] sm:$0xff]  }
 0x2e4   : > { %3627 = vmatprep.subr.bf16.mxu1 %v3954_v15  ;;  %3647 = vmatprep.subr.bf16.mxu0 %v3954_v15 }
 0x2e5   : > { %v1971_v44 = vadd.f32 %v5065_v16, %v1811_v41  ;;  %v3431_v51 = vpop.f32.mrb[116].mxu1  ;;  %3614 = vmatmul.mubr.bf16.gmra.mrb[116].mxu0 %v2048_v8  ;;  %3641 = vmatprep.mubr.msk.bf16.mxu1 %vm3955_vm6, %v3954_v15 }
 0x2e6   : > { %v3432_v13 = vpop.f32.mrb[117].mxu1 }
 0x2e7   : > { %v2009_v40 = vpack.c.bf16 %v1971_v44, %v1968_v21  ;;  %v3433_v14 = vadd.f32 %v3432_v13, %v3431_v51  ;;  %v3434_v53 = vpop.f32.mrb[118].mxu1  ;;  %3628 = vmatpush3.bf16.msra.mxu1 %v3846_v37  ;;  %v3854_v51 = vld [vmem:[%s5019_s7 + $0x20] sm:$0xff]  }
 0x2e8   : > { %v3435_v54 = vpop.f32.mrb[119].mxu1  ;;  %3629 = vmatprep.subr.bf16.mxu1 %v3954_v15 }
 0x2e9   : > { %v1816_v52 = vadd.f32 %v3433_v14, %v5066_v48  ;;  %v3436_v1 = vadd.f32 %v3435_v54, %v3434_v53  ;;  %v2033_v50 = vadd.bf16 %v4658_v11, %v2009_v40  ;;  %v3856_v54 = vld [vmem:[%s5019_s7 + $0x28] sm:$0xff]  }
 0x2eb   : > { %v1976_v56 = vadd.f32 %v5067_v61, %v1816_v52  ;;  %v1819_v20 = vadd.f32 %v3436_v1, %v5068_v26  ;;  %v2049_v10 = vmax.bf16 %v5058_v7, %v2033_v50  ;;  %v3857_v50 = vld [vmem:[%s5019_s7 + $0x30] sm:$0xff]  }
 0x2ed   : > { %v1979_v5 = vadd.f32 %v5069_v46, %v1819_v20  ;;  %v3437_v32 = vpop.f32.mrb[120].mxu1  ;;  %3617 = vmatprep.mubr.bf16.mxu0 %v2049_v10  ;;  %v3847_v20 = vld [vmem:[%s5020_s8 + $0x10] sm:$0xff]   ;;  %v3858_v10 = vld [vmem:[%s5019_s7 + $0x38] sm:$0xff]  }
 0x2ee   : > { %v3438_v12 = vpop.f32.mrb[121].mxu1  ;;  %3630 = vmatpush3.bf16.msra.mxu1 %v3847_v20  ;;  %v3855_v20 = vld [vmem:[%s5020_s8 + $0x28] sm:$0xff]  }
 0x2ef   : > { %v2010_v25 = vpack.c.bf16 %v1979_v5, %v1976_v56  ;;  %v3439_v31 = vadd.f32 %v3438_v12, %v3437_v32  ;;  %v3440_v22 = vpop.f32.mrb[122].mxu1  ;;  %3631 = vmatprep.subr.bf16.mxu1 %v3954_v15 }
 0x2f0   : > { %v3441_v38 = vpop.f32.mrb[123].mxu1 }
 0x2f1   : > { %v1824_v2 = vadd.f32 %v3439_v31, %v5070_v47  ;;  %v3442_v24 = vadd.f32 %v3441_v38, %v3440_v22  ;;  %v2034_v49 = vadd.bf16 %v4658_v11, %v2010_v25 }
 0x2f3   : > { %v1984_v36 = vadd.f32 %v5071_v23, %v1824_v2  ;;  %v1827_v57 = vadd.f32 %v3442_v24, %v5072_v33  ;;  %v2050_v17 = vmax.bf16 %v5058_v7, %v2034_v49 }
 0x2f5   : > { %v1987_v55 = vadd.f32 %v5073_v35, %v1827_v57  ;;  %v3443_v27 = vpop.f32.mrb[124].mxu1  ;;  %3618 = vmatmul.mubr.bf16.gmra.mrb[120].mxu0 %v2050_v17 }
 0x2f6   : > { %v3444_v0 = vpop.f32.mrb[125].mxu1 }
 0x2f7   : > { %v2011_v39 = vpack.c.bf16 %v1987_v55, %v1984_v36  ;;  %v3445_v59 = vadd.f32 %v3444_v0, %v3443_v27  ;;  %v3446_v60 = vpop.f32.mrb[126].mxu1 }
 0x2f8   : > { %v3447_v18 = vpop.f32.mrb[127].mxu1 }
 0x2f9   : > { %v1832_v19 = vadd.f32 %v3445_v59, %v5074_v62  ;;  %v2035_v29 = vadd.bf16 %v4658_v11, %v2011_v39 }
 0x2fb   : > { %v1992_v9 = vadd.f32 %v5075_v3, %v1832_v19  ;;  %v2051_v42 = vmax.bf16 %v5058_v7, %v2035_v29 }
 0x2fd   : > { %v2012_v6 = vpack.c.bf16 %v1992_v9, %v1992_v9  ;;  %3621 = vmatprep.mubr.bf16.mxu0 %v2051_v42 }
 0x2ff   : > { %v2036_v63 = vadd.bf16 %v4658_v11, %v2012_v6  ;;  %v3851_v11 = vld [vmem:[%s5019_s7 + $0x8] sm:$0xff]   ;;  %v3848_v6 = vld [vmem:[%s5020_s8 + $0x18] sm:$0xff]  }
 0x300   : > { %3648 = vmatpush3.bf16.msra.mxu0 %v3851_v11  ;;  %3632 = vmatpush3.bf16.msra.mxu1 %v3848_v6 }
 0x301   : > { %v2052_v43 = vmax.bf16 %v5058_v7, %v2036_v63  ;;  %3649 = vmatprep.subr.bf16.mxu0 %v3954_v15  ;;  %v3852_v7 = vld [vmem:[%s5019_s7 + $0x10] sm:$0xff]   ;;  %3633 = vmatprep.subr.bf16.mxu1 %v3954_v15 }
 0x303   : > { %3622 = vmatmul.mubr.bf16.gmra.mrb[124].mxu0 %v2052_v43 }
 0x304   : > { %3650 = vmatpush3.bf16.msra.mxu0 %v3852_v7  ;;  %3661 = vmatprep.mubr.msk.bf16.mxu0 %vm3955_vm6, %v3954_v15 }
 0x305   : > { %3651 = vmatprep.subr.bf16.mxu0 %v3954_v15 }
 0x308   : > { %3652 = vmatpush3.bf16.msra.mxu0 %v3853_v28 }
 0x309   : > { %3653 = vmatprep.subr.bf16.mxu0 %v3954_v15 }
 0x30c   : > { %3654 = vmatpush3.bf16.msra.mxu0 %v3854_v51 }
 0x30d   : > { %3655 = vmatprep.subr.bf16.mxu0 %v3954_v15 }
 0x310   : > { %3656 = vmatpush3.bf16.msra.mxu0 %v3856_v54 }
 0x311   : > { %3657 = vmatprep.subr.bf16.mxu0 %v3954_v15 }
 0x314   : > { %3658 = vmatpush3.bf16.msra.mxu0 %v3857_v50 }
 0x315   : > { %3659 = vmatprep.subr.bf16.mxu0 %v3954_v15 }
 0x318   : > { %3660 = vmatpush3.bf16.msra.mxu0 %v3858_v10 }
 0x319   : > { %3685 = vmatprep.subr.bf16.mxu0 %v3954_v15 }
 0x368   : > { %v3595_v4 = vpop.f32.mrb[96].mxu0 }
 0x369   : > { %v2167_v45 = vadd.f32 %v3595_v4, %v4771_v58  ;;  %v2158_v21 = vpop.f32.mrb[97].mxu0 }
 0x36a   : > { %v2159_v41 = vadd.f32 %v4771_v58, %v2158_v21  ;;  %v3596_v8 = vpop.f32.mrb[98].mxu0 }
 0x36b   : > { %v2161_v16 = vpop.f32.mrb[99].mxu0  ;;  %v2279_v13 = vmax.f32 %v2167_v45, 0.0 }
 0x36c   : > { %v2162_v44 = vadd.f32 %v4771_v58, %v2161_v16  ;;  %v2277_v40 = vmax.f32 %v2159_v41, 0.0 }
 0x36d   : > { %v2303_v48 = vsel %vm1149_vm3, %v2279_v13, 0.0 }
 0x36e   : > { %v2278_v14 = vmax.f32 %v2162_v44, 0.0 }
 0x370   : > { %v2301_v53 = vadd.f32 %v2278_v14, %v2277_v40 }
 0x372   : > { %v2304_v52 = vadd.f32 %v2303_v48, %v2301_v53 }
 0x374   : > { %v2305_v1 = vrot.slane %v2304_v52, 4 }
 0x376   : > { %v2306_v61 = vadd.f32 %v2305_v1, %v2304_v52 }
 0x378   : > { %v2307_v56 = vrot.slane %v2306_v61, 2  ;;  %v3599_v26 = vpop.f32.mrb[100].mxu0 }
 0x379   : > { %v4805_v46 = vadd.f32 %v3599_v26, %v4771_v58  ;;  %v2173_v5 = vpop.f32.mrb[101].mxu0 }
 0x37a   : > { %v2308_v32 = vadd.f32 %v2307_v56, %v2306_v61  ;;  %v2174_v12 = vadd.f32 %v4771_v58, %v2173_v5  ;;  %v3600_v25 = vpop.f32.mrb[102].mxu0 }
 0x37b   : > { %v2176_v31 = vpop.f32.mrb[103].mxu0  ;;  %v2282_v47 = vmax.f32 %v4805_v46, 0.0  ;;  %v3859_v25 = vld [vmem:[%s5020_s8 + $0x30] sm:$0xff]  }
 0x37c   : > { %v2309_v22 = vrot.slane %v2308_v32, 1  ;;  %v2177_v38 = vadd.f32 %v4771_v58, %v2176_v31  ;;  %v2280_v24 = vmax.f32 %v2174_v12, 0.0 }
 0x37d   : > { %v2338_v33 = vsel %vm1149_vm3, %v2282_v47, 0.0 }
 0x37e   : > { %v2310_v2 = vadd.f32 %v2309_v22, %v2308_v32  ;;  %v2281_v49 = vmax.f32 %v2177_v38, 0.0 }
 0x380   : > { %v2311_v23 = vmul.f32 0.05, %v2310_v2  ;;  %v2337_v36 = vadd.f32 %v2281_v49, %v2280_v24 }
 0x382   : > { %v2312_v57 = vsub.f32 %v2277_v40, %v2311_v23  ;;  %v2313_v17 = vsub.f32 %v2278_v14, %v2311_v23  ;;  %v2314_v35 = vsub.f32 %v2279_v13, %v2311_v23  ;;  %2328 = vst [vmem:[#allocation2] sm:$0x1] %v2311_v23  ;;  %v2339_v55 = vadd.f32 %v2338_v33, %v2337_v36  ;;  %v3850_v40 = vld [vmem:[%s5020_s8 + $0x20] sm:$0xff]   ;;  %v3860_v33 = vld [vmem:[%s5020_s8 + $0x38] sm:$0xff]  }
 0x383   : > { %3634 = vmatpush3.bf16.msra.mxu1 %v3850_v40 }
 0x384   : > { %v2315_v27 = vmul.f32 %v2312_v57, %v2312_v57  ;;  %v2316_v0 = vmul.f32 %v2313_v17, %v2313_v17  ;;  %v2317_v39 = vmul.f32 %v2314_v35, %v2314_v35  ;;  %v2340_v59 = vrot.slane %v2339_v55, 4  ;;  %3635 = vmatprep.subr.bf16.mxu1 %v3954_v15 }
 0x386   : > { %v2318_v60 = vadd.f32 %v2316_v0, %v2315_v27  ;;  %v2319_v18 = vsel %vm1149_vm3, %v2317_v39, 0.0  ;;  %v2341_v62 = vadd.f32 %v2340_v59, %v2339_v55 }
 0x387   : > { %3636 = vmatpush3.bf16.msra.mxu1 %v3855_v20 }
 0x388   : > { %v2320_v19 = vadd.f32 %v2319_v18, %v2318_v60  ;;  %v2342_v29 = vrot.slane %v2341_v62, 2  ;;  %v3603_v3 = vpop.f32.mrb[104].mxu0  ;;  %3637 = vmatprep.subr.bf16.mxu1 %v3954_v15 }
 0x389   : > { %v4819_v9 = vadd.f32 %v3603_v3, %v4771_v58  ;;  %v2188_v42 = vpop.f32.mrb[105].mxu0 }
 0x38a   : > { %v2321_v63 = vrot.slane %v2320_v19, 4  ;;  %v2343_v43 = vadd.f32 %v2342_v29, %v2341_v62  ;;  %v4825_v34 = vadd.f32 %v4771_v58, %v2188_v42  ;;  %v3604_v30 = vpop.f32.mrb[106].mxu0 }
 0x38b   : > { %v2191_v11 = vpop.f32.mrb[107].mxu0  ;;  %v2285_v45 = vmax.f32 %v4819_v9, 0.0  ;;  %3638 = vmatpush3.bf16.msra.mxu1 %v3859_v25 }
 0x38c   : > { %v2322_v7 = vadd.f32 %v2321_v63, %v2320_v19  ;;  %v2344_v4 = vrot.slane %v2343_v43, 1  ;;  %v4828_v28 = vadd.f32 %v4771_v58, %v2191_v11  ;;  %v2283_v41 = vmax.f32 %v4825_v34, 0.0  ;;  %3639 = vmatprep.subr.bf16.mxu1 %v3954_v15 }
 0x38d   : > { %v2373_v13 = vsel %vm1149_vm3, %v2285_v45, 0.0 }
 0x38e   : > { %v2323_v21 = vrot.slane %v2322_v7, 2  ;;  %v2345_v37 = vadd.f32 %v2344_v4, %v2343_v43  ;;  %v2284_v8 = vmax.f32 %v4828_v28, 0.0 }
 0x38f   : > { %3640 = vmatpush3.bf16.msra.mxu1 %v3860_v33 }
 0x390   : > { %v2324_v16 = vadd.f32 %v2323_v21, %v2322_v7  ;;  %v2346_v44 = vmul.f32 0.05, %v2345_v37  ;;  %v2372_v51 = vadd.f32 %v2284_v8, %v2283_v41  ;;  %3665 = vmatprep.subr.bf16.mxu1 %v3954_v15 }
 0x392   : > { %v2325_v14 = vrot.slane %v2324_v16, 1  ;;  %v2347_v53 = vsub.f32 %v2280_v24, %v2346_v44  ;;  %v2348_v54 = vsub.f32 %v2281_v49, %v2346_v44  ;;  %v2349_v48 = vsub.f32 %v2282_v47, %v2346_v44  ;;  %2363 = vst [vmem:[#allocation2 + $0x1] sm:$0x1] %v2346_v44 }
 0x393   : > { %v2374_v52 = vadd.f32 %v2373_v13, %v2372_v51 }
 0x394   : > { %v2326_v1 = vadd.f32 %v2325_v14, %v2324_v16  ;;  %v2350_v50 = vmul.f32 %v2347_v53, %v2347_v53  ;;  %v2351_v61 = vmul.f32 %v2348_v54, %v2348_v54  ;;  %v2352_v56 = vmul.f32 %v2349_v48, %v2349_v48 }
 0x395   : > { %v2375_v26 = vrot.slane %v2374_v52, 4 }
 0x396   : > { %v2327_v10 = vmul.f32 0.05263158, %v2326_v1  ;;  %v2353_v46 = vadd.f32 %v2351_v61, %v2350_v50  ;;  %v2354_v5 = vsel %vm1149_vm3, %v2352_v56, 0.0 }
 0x397   : > { %v2376_v32 = vadd.f32 %v2375_v26, %v2374_v52 }
 0x398   : > { %3873 = vrsqrt.f32 %v2327_v10  ;;  %v3607_v12 = vpop.f32.mrb[108].mxu0  ;;  %v2355_v31 = vadd.f32 %v2354_v5, %v2353_v46  ;;  %vm2331_vm7 = vcmp.eq.f32.partialorder %v2327_v10, inf  ;;  %vm2333_vm8 = vcmp.eq.f32.partialorder %v2327_v10, 0.0 }
 0x399   : > { %v2377_v22 = vrot.slane %v2376_v32, 2  ;;  %v4850_v38 = vadd.f32 %v3607_v12, %v4771_v58  ;;  %v2203_v47 = vpop.f32.mrb[109].mxu0  ;;  %v2334_v34 = vand.u32 2147483648, %v2327_v10 }
 0x39a   : > { %v4853_v2 = vadd.f32 %v4771_v58, %v2203_v47  ;;  %v3608_v24 = vpop.f32.mrb[110].mxu0  ;;  %v2356_v49 = vrot.slane %v2355_v31, 4 }
 0x39b   : > { %v2378_v23 = vadd.f32 %v2377_v22, %v2376_v32  ;;  %v2206_v36 = vpop.f32.mrb[111].mxu0  ;;  %v2288_v55 = vmax.f32 %v4850_v38, 0.0 }
 0x39c   : > { %v4859_v57 = vadd.f32 %v4771_v58, %v2206_v36  ;;  %v2357_v17 = vadd.f32 %v2356_v49, %v2355_v31  ;;  %v2286_v27 = vmax.f32 %v4853_v2, 0.0 }
 0x39d   : > { %v2379_v35 = vrot.slane %v2378_v23, 1  ;;  %v2408_v19 = vsel %vm1149_vm3, %v2288_v55, 0.0 }
 0x39e   : > { %v2287_v0 = vmax.f32 %v4859_v57, 0.0  ;;  %v2358_v39 = vrot.slane %v2357_v17, 2 }
 0x39f   : > { %v2380_v59 = vadd.f32 %v2379_v35, %v2378_v23 }
 0x3a0   : > { %v2407_v60 = vadd.f32 %v2287_v0, %v2286_v27  ;;  %v2359_v18 = vadd.f32 %v2358_v39, %v2357_v17 }
 0x3a1   : > { %v2381_v62 = vmul.f32 0.05, %v2380_v59 }
 0x3a2   : > { %v3874_v29 = vpop.eup %3873  ;;  %v2409_v3 = vadd.f32 %v2408_v19, %v2407_v60  ;;  %v2360_v6 = vrot.slane %v2359_v18, 1 }
 0x3a3   : > { %v2330_v42 = vmul.f32 %v3874_v29, %v2327_v10  ;;  %v2382_v63 = vsub.f32 %v2283_v41, %v2381_v62  ;;  %v2383_v43 = vsub.f32 %v2284_v8, %v2381_v62  ;;  %2398 = vst [vmem:[#allocation2 + $0x2] sm:$0x1] %v2381_v62  ;;  %v2384_v30 = vsub.f32 %v2285_v45, %v2381_v62 }
 0x3a4   : > { %v2410_v11 = vrot.slane %v2409_v3, 4  ;;  %v2361_v4 = vadd.f32 %v2360_v6, %v2359_v18 }
 0x3a5   : > { %v2332_v7 = vsel %vm2331_vm7, %v2327_v10, %v2330_v42  ;;  %v2385_v28 = vmul.f32 %v2382_v63, %v2382_v63  ;;  %v2386_v21 = vmul.f32 %v2383_v43, %v2383_v43  ;;  %v2387_v16 = vmul.f32 %v2384_v30, %v2384_v30 }
 0x3a6   : > { %v2335_v37 = vsel %vm2333_vm8, %v2334_v34, %v2332_v7  ;;  %v2411_v44 = vadd.f32 %v2410_v11, %v2409_v3  ;;  %v2362_v51 = vmul.f32 0.05263158, %v2361_v4 }
 0x3a7   : > { %2336 = vst [vmem:[#allocation3] sm:$0x1] %v2335_v37  ;;  %v2388_v13 = vadd.f32 %v2386_v21, %v2385_v28  ;;  %v2389_v41 = vsel %vm1149_vm3, %v2387_v16, 0.0 }
 0x3a8   : > { %v2412_v8 = vrot.slane %v2411_v44, 2  ;;  %v3611_v40 = vpop.f32.mrb[112].mxu0  ;;  %3875 = vrsqrt.f32 %v2362_v51  ;;  %vm2366_vm9 = vcmp.eq.f32.partialorder %v2362_v51, inf  ;;  %v2369_v57 = vand.u32 2147483648, %v2362_v51 }
 0x3a9   : > { %v2218_v14 = vpop.f32.mrb[113].mxu0  ;;  %v2390_v53 = vadd.f32 %v2389_v41, %v2388_v13  ;;  %v4871_v45 = vadd.f32 %v3611_v40, %v4771_v58  ;;  %vm2368_vm10 = vcmp.eq.f32.partialorder %v2362_v51, 0.0 }
 0x3aa   : > { %v2413_v9 = vadd.f32 %v2412_v8, %v2411_v44  ;;  %v3612_v54 = vpop.f32.mrb[114].mxu0  ;;  %v4874_v48 = vadd.f32 %v4771_v58, %v2218_v14 }
 0x3ab   : > { %v2221_v52 = vpop.f32.mrb[115].mxu0  ;;  %v2391_v1 = vrot.slane %v2390_v53, 4  ;;  %v2291_v61 = vmax.f32 %v4871_v45, 0.0 }
 0x3ac   : > { %v2414_v50 = vrot.slane %v2413_v9, 1  ;;  %v2222_v56 = vadd.f32 %v4771_v58, %v2221_v52  ;;  %v2289_v10 = vmax.f32 %v4874_v48, 0.0 }
 0x3ad   : > { %v2392_v26 = vadd.f32 %v2391_v1, %v2390_v53  ;;  %v2443_v12 = vsel %vm1149_vm3, %v2291_v61, 0.0 }
 0x3ae   : > { %v2415_v20 = vadd.f32 %v2414_v50, %v2413_v9  ;;  %v2290_v46 = vmax.f32 %v2222_v56, 0.0 }
 0x3af   : > { %v2393_v5 = vrot.slane %v2392_v26, 2 }
 0x3b0   : > { %v2416_v32 = vmul.f32 0.05, %v2415_v20  ;;  %v2442_v25 = vadd.f32 %v2290_v46, %v2289_v10 }
 0x3b1   : > { %v2394_v31 = vadd.f32 %v2393_v5, %v2392_v26 }
 0x3b2   : > { %v2417_v22 = vsub.f32 %v2286_v27, %v2416_v32  ;;  %v2418_v38 = vsub.f32 %v2287_v0, %v2416_v32  ;;  %v2419_v47 = vsub.f32 %v2288_v55, %v2416_v32  ;;  %2433 = vst [vmem:[#allocation2 + $0x3] sm:$0x1] %v2416_v32  ;;  %v3876_v2 = vpop.eup %3875  ;;  %v2444_v24 = vadd.f32 %v2443_v12, %v2442_v25 }
 0x3b3   : > { %v2365_v49 = vmul.f32 %v3876_v2, %v2362_v51  ;;  %v2395_v23 = vrot.slane %v2394_v31, 1 }
 0x3b4   : > { %v2420_v36 = vmul.f32 %v2417_v22, %v2417_v22  ;;  %v2421_v33 = vmul.f32 %v2418_v38, %v2418_v38  ;;  %v2422_v17 = vmul.f32 %v2419_v47, %v2419_v47  ;;  %v2445_v35 = vrot.slane %v2444_v24, 4 }
 0x3b5   : > { %v2367_v39 = vsel %vm2366_vm9, %v2362_v51, %v2365_v49  ;;  %v2396_v59 = vadd.f32 %v2395_v23, %v2394_v31 }
 0x3b6   : > { %v2423_v60 = vadd.f32 %v2421_v33, %v2420_v36  ;;  %v2370_v18 = vsel %vm2368_vm10, %v2369_v57, %v2367_v39  ;;  %v2424_v27 = vsel %vm1149_vm3, %v2422_v17, 0.0  ;;  %v2446_v0 = vadd.f32 %v2445_v35, %v2444_v24 }
 0x3b7   : > { %2371 = vst [vmem:[#allocation3 + $0x1] sm:$0x1] %v2370_v18  ;;  %v2397_v55 = vmul.f32 0.05263158, %v2396_v59 }
 0x3b8   : > { %v2425_v62 = vadd.f32 %v2424_v27, %v2423_v60  ;;  %v3615_v19 = vpop.f32.mrb[116].mxu0  ;;  %v2447_v29 = vrot.slane %v2446_v0, 2 }
 0x3b9   : > { %v4882_v3 = vadd.f32 %v3615_v19, %v4771_v58  ;;  %v2233_v42 = vpop.f32.mrb[117].mxu0  ;;  %3877 = vrsqrt.f32 %v2397_v55  ;;  %vm2401_vm11 = vcmp.eq.f32.partialorder %v2397_v55, inf  ;;  %v2404_v26 = vand.u32 2147483648, %v2397_v55 }
 0x3ba   : > { %v3616_v6 = vpop.f32.mrb[118].mxu0  ;;  %v2426_v63 = vrot.slane %v2425_v62, 4  ;;  %v2448_v43 = vadd.f32 %v2447_v29, %v2446_v0  ;;  %v2234_v34 = vadd.f32 %v4771_v58, %v2233_v42  ;;  %vm2403_vm12 = vcmp.eq.f32.partialorder %v2397_v55, 0.0 }
 0x3bb   : > { %v2236_v30 = vpop.f32.mrb[119].mxu0  ;;  %v2294_v28 = vmax.f32 %v4882_v3, 0.0 }
 0x3bc   : > { %v2237_v11 = vadd.f32 %v4771_v58, %v2236_v30  ;;  %v2427_v7 = vadd.f32 %v2426_v63, %v2425_v62  ;;  %v2449_v4 = vrot.slane %v2448_v43, 1  ;;  %v2292_v21 = vmax.f32 %v2234_v34, 0.0 }
 0x3bd   : > { %v2478_v8 = vsel %vm1149_vm3, %v2294_v28, 0.0 }
 0x3be   : > { %v2293_v37 = vmax.f32 %v2237_v11, 0.0  ;;  %v2428_v16 = vrot.slane %v2427_v7, 2  ;;  %v2450_v44 = vadd.f32 %v2449_v4, %v2448_v43 }
 0x3c0   : > { %v2477_v51 = vadd.f32 %v2293_v37, %v2292_v21  ;;  %v2429_v13 = vadd.f32 %v2428_v16, %v2427_v7  ;;  %v2451_v41 = vmul.f32 0.05, %v2450_v44 }
 0x3c2   : > { %v2479_v40 = vadd.f32 %v2478_v8, %v2477_v51  ;;  %v2430_v14 = vrot.slane %v2429_v13, 1  ;;  %v2452_v53 = vsub.f32 %v2289_v10, %v2451_v41  ;;  %v2453_v9 = vsub.f32 %v2290_v46, %v2451_v41  ;;  %2468 = vst [vmem:[#allocation2 + $0x4] sm:$0x1] %v2451_v41 }
 0x3c3   : > { %v2454_v45 = vsub.f32 %v2291_v61, %v2451_v41  ;;  %v3878_v54 = vpop.eup %3877 }
 0x3c4   : > { %v2480_v48 = vrot.slane %v2479_v40, 4  ;;  %v2400_v52 = vmul.f32 %v3878_v54, %v2397_v55  ;;  %v2431_v1 = vadd.f32 %v2430_v14, %v2429_v13  ;;  %v2455_v50 = vmul.f32 %v2452_v53, %v2452_v53 }
 0x3c5   : > { %v2456_v56 = vmul.f32 %v2453_v9, %v2453_v9  ;;  %v2457_v20 = vmul.f32 %v2454_v45, %v2454_v45 }
 0x3c6   : > { %v2481_v5 = vadd.f32 %v2480_v48, %v2479_v40  ;;  %v2402_v32 = vsel %vm2401_vm11, %v2397_v55, %v2400_v52  ;;  %v2432_v12 = vmul.f32 0.05263158, %v2431_v1 }
 0x3c7   : > { %v2458_v25 = vadd.f32 %v2456_v56, %v2455_v50  ;;  %v2405_v31 = vsel %vm2403_vm12, %v2404_v26, %v2402_v32  ;;  %v2459_v10 = vsel %vm1149_vm3, %v2457_v20, 0.0 }
 0x3c8   : > { %v2482_v46 = vrot.slane %v2481_v5, 2  ;;  %v3619_v61 = vpop.f32.mrb[120].mxu0  ;;  %2406 = vst [vmem:[#allocation3 + $0x2] sm:$0x1] %v2405_v31  ;;  %3879 = vrsqrt.f32 %v2432_v12  ;;  %vm2436_vm13 = vcmp.eq.f32.partialorder %v2432_v12, inf  ;;  %v2439_v11 = vand.u32 2147483648, %v2432_v12 }
 0x3c9   : > { %v2248_v22 = vpop.f32.mrb[121].mxu0  ;;  %v2460_v38 = vadd.f32 %v2459_v10, %v2458_v25  ;;  %v4890_v2 = vadd.f32 %v3619_v61, %v4771_v58  ;;  %vm2438_vm14 = vcmp.eq.f32.partialorder %v2432_v12, 0.0 }
 0x3ca   : > { %v2483_v47 = vadd.f32 %v2482_v46, %v2481_v5  ;;  %v3620_v24 = vpop.f32.mrb[122].mxu0  ;;  %v4893_v49 = vadd.f32 %v4771_v58, %v2248_v22 }
 0x3cb   : > { %v2251_v23 = vpop.f32.mrb[123].mxu0  ;;  %v2461_v36 = vrot.slane %v2460_v38, 4  ;;  %v2297_v57 = vmax.f32 %v4890_v2, 0.0 }
 0x3cc   : > { %v2484_v33 = vrot.slane %v2483_v47, 1  ;;  %v2252_v17 = vadd.f32 %v4771_v58, %v2251_v23  ;;  %v2295_v59 = vmax.f32 %v4893_v49, 0.0 }
 0x3cd   : > { %v2462_v35 = vadd.f32 %v2461_v36, %v2460_v38  ;;  %v2513_v0 = vsel %vm1149_vm3, %v2297_v57, 0.0 }
 0x3ce   : > { %v2485_v39 = vadd.f32 %v2484_v33, %v2483_v47  ;;  %v2296_v60 = vmax.f32 %v2252_v17, 0.0 }
 0x3cf   : > { %v2463_v18 = vrot.slane %v2462_v35, 2 }
 0x3d0   : > { %v2486_v27 = vmul.f32 0.05, %v2485_v39  ;;  %v2512_v55 = vadd.f32 %v2296_v60, %v2295_v59 }
 0x3d1   : > { %v2464_v62 = vadd.f32 %v2463_v18, %v2462_v35 }
 0x3d2   : > { %v2487_v19 = vsub.f32 %v2292_v21, %v2486_v27  ;;  %v2488_v29 = vsub.f32 %v2293_v37, %v2486_v27  ;;  %v2489_v3 = vsub.f32 %v2294_v28, %v2486_v27  ;;  %2503 = vst [vmem:[#allocation2 + $0x5] sm:$0x1] %v2486_v27  ;;  %v3880_v42 = vpop.eup %3879  ;;  %v2514_v6 = vadd.f32 %v2513_v0, %v2512_v55 }
 0x3d3   : > { %v2435_v63 = vmul.f32 %v3880_v42, %v2432_v12  ;;  %v2465_v43 = vrot.slane %v2464_v62, 1 }
 0x3d4   : > { %v2490_v34 = vmul.f32 %v2487_v19, %v2487_v19  ;;  %v2491_v30 = vmul.f32 %v2488_v29, %v2488_v29  ;;  %v2492_v7 = vmul.f32 %v2489_v3, %v2489_v3  ;;  %v2515_v4 = vrot.slane %v2514_v6, 4 }
 0x3d5   : > { %v2437_v16 = vsel %vm2436_vm13, %v2432_v12, %v2435_v63  ;;  %v2466_v44 = vadd.f32 %v2465_v43, %v2464_v62 }
 0x3d6   : > { %v2493_v51 = vadd.f32 %v2491_v30, %v2490_v34  ;;  %v3623_v13 = vpop.f32.mrb[124].mxu0  ;;  %v2440_v41 = vsel %vm2438_vm14, %v2439_v11, %v2437_v16  ;;  %v2494_v21 = vsel %vm1149_vm3, %v2492_v7, 0.0  ;;  %v2516_v28 = vadd.f32 %v2515_v4, %v2514_v6 }
 0x3d7   : > { %v2263_v37 = vpop.f32.mrb[125].mxu0  ;;  %2441 = vst [vmem:[#allocation3 + $0x3] sm:$0x1] %v2440_v41  ;;  %v2467_v8 = vmul.f32 0.05263158, %v2466_v44  ;;  %v2272_v9 = vadd.f32 %v3623_v13, %v4771_v58 }
 0x3d8   : > { %v2495_v40 = vadd.f32 %v2494_v21, %v2493_v51  ;;  %v3624_v14 = vpop.f32.mrb[126].mxu0  ;;  %v2517_v53 = vrot.slane %v2516_v28, 2  ;;  %v2264_v54 = vadd.f32 %v4771_v58, %v2263_v37 }
 0x3d9   : > { %v2266_v45 = vpop.f32.mrb[127].mxu0  ;;  %3881 = vrsqrt.f32 %v2467_v8  ;;  %v2300_v26 = vmax.f32 %v2272_v9, 0.0  ;;  %vm2471_vm15 = vcmp.eq.f32.partialorder %v2467_v8, inf  ;;  %v2474_v17 = vand.u32 2147483648, %v2467_v8 }
 0x3da   : > { %v2496_v48 = vrot.slane %v2495_v40, 4  ;;  %v2518_v52 = vadd.f32 %v2517_v53, %v2516_v28  ;;  %v2267_v1 = vadd.f32 %v4771_v58, %v2266_v45  ;;  %v2298_v20 = vmax.f32 %v2264_v54, 0.0 }
 0x3db   : > { %v2548_v46 = vsel %vm1149_vm3, %v2300_v26, 0.0  ;;  %vm2473_vm0 = vcmp.eq.f32.partialorder %v2467_v8, 0.0 }
 0x3dc   : > { %v2497_v50 = vadd.f32 %v2496_v48, %v2495_v40  ;;  %v2519_v56 = vrot.slane %v2518_v52, 1  ;;  %v2299_v5 = vmax.f32 %v2267_v1, 0.0 }
 0x3de   : > { %v2498_v32 = vrot.slane %v2497_v50, 2  ;;  %v2520_v12 = vadd.f32 %v2519_v56, %v2518_v52  ;;  %v2547_v25 = vadd.f32 %v2299_v5, %v2298_v20 }
 0x3e0   : > { %v2499_v31 = vadd.f32 %v2498_v32, %v2497_v50  ;;  %v2521_v10 = vmul.f32 0.05, %v2520_v12  ;;  %v2549_v61 = vadd.f32 %v2548_v46, %v2547_v25 }
 0x3e2   : > { %v2500_v22 = vrot.slane %v2499_v31, 1  ;;  %v2522_v38 = vsub.f32 %v2295_v59, %v2521_v10  ;;  %v2523_v47 = vsub.f32 %v2296_v60, %v2521_v10  ;;  %v2524_v2 = vsub.f32 %v2297_v57, %v2521_v10  ;;  %2538 = vst [vmem:[#allocation2 + $0x6] sm:$0x1] %v2521_v10 }
 0x3e3   : > { %v3882_v24 = vpop.eup %3881  ;;  %v2550_v58 = vrot.slane %v2549_v61, 4 }
 0x3e4   : > { %v2470_v49 = vmul.f32 %v3882_v24, %v2467_v8  ;;  %v2501_v23 = vadd.f32 %v2500_v22, %v2499_v31  ;;  %v2525_v36 = vmul.f32 %v2522_v38, %v2522_v38  ;;  %v2526_v33 = vmul.f32 %v2523_v47, %v2523_v47  ;;  %v3862_v24 = vld [vmem:[%s5022_s10 + $0x8] sm:$0xff]  }
 0x3e5   : > { %v2527_v35 = vmul.f32 %v2524_v2, %v2524_v2  ;;  %v2551_v39 = vadd.f32 %v2550_v58, %v2549_v61  ;;  %v3861_v2 = vld [vmem:[%s5022_s10] sm:$0xff]   ;;  %v3863_v58 = vld [vmem:[%s5022_s10 + $0x10] sm:$0xff]  }
 0x3e6   : > { %v2472_v18 = vsel %vm2471_vm15, %v2467_v8, %v2470_v49  ;;  %v2502_v27 = vmul.f32 0.05263158, %v2501_v23  ;;  %v2528_v0 = vadd.f32 %v2526_v33, %v2525_v36  ;;  %v3864_v49 = vld [vmem:[%s5022_s10 + $0x18] sm:$0xff]   ;;  %v3865_v23 = vld [vmem:[%s5022_s10 + $0x20] sm:$0xff]   ;;  %v3866_v36 = vld [vmem:[%s5022_s10 + $0x28] sm:$0xff]  }
 0x3e7   : > { %v2475_v55 = vsel %vm2473_vm0, %v2474_v17, %v2472_v18  ;;  %v2529_v59 = vsel %vm1149_vm3, %v2527_v35, 0.0  ;;  %v2552_v60 = vrot.slane %v2551_v39, 2  ;;  %v3867_v33 = vld [vmem:[%s5022_s10 + $0x30] sm:$0xff]   ;;  %v3868_v17 = vld [vmem:[%s5022_s10 + $0x38] sm:$0xff]   ;;  %v3869_v35 = vld [vmem:[%s5024_s12] sm:$0xff]  }
 0x3e8   : > { %2476 = vst [vmem:[#allocation3 + $0x4] sm:$0x1] %v2475_v55  ;;  %3883 = vrsqrt.f32 %v2502_v27  ;;  %v2530_v57 = vadd.f32 %v2529_v59, %v2528_v0  ;;  %vm2506_vm1 = vcmp.eq.f32.partialorder %v2502_v27, inf  ;;  %v2509_v13 = vand.u32 2147483648, %v2502_v27 }
 0x3e9   : > { %v2553_v62 = vadd.f32 %v2552_v60, %v2551_v39  ;;  %vm2508_vm2 = vcmp.eq.f32.partialorder %v2502_v27, 0.0  ;;  %v3870_v39 = vld [vmem:[%s5024_s12 + $0x8] sm:$0xff]   ;;  %v3204_v60 = vld [vmem:[%s5021_s9] ss:$0 sm:$0xff] }
 0x3ea   : > { %v2531_v19 = vrot.slane %v2530_v57, 4 }
 0x3eb   : > { %v2554_v29 = vrot.slane %v2553_v62, 1 }
 0x3ec   : > { %v2532_v3 = vadd.f32 %v2531_v19, %v2530_v57 }
 0x3ed   : > { %v2555_v42 = vadd.f32 %v2554_v29, %v2553_v62 }
 0x3ee   : > { %v2533_v6 = vrot.slane %v2532_v3, 2 }
 0x3ef   : > { %v2556_v63 = vmul.f32 0.05, %v2555_v42 }
 0x3f0   : > { %v2534_v43 = vadd.f32 %v2533_v6, %v2532_v3 }
 0x3f1   : > { %v2557_v34 = vsub.f32 %v2298_v20, %v2556_v63  ;;  %v2558_v30 = vsub.f32 %v2299_v5, %v2556_v63  ;;  %v2559_v11 = vsub.f32 %v2300_v26, %v2556_v63  ;;  %2573 = vst [vmem:[#allocation2 + $0x7] sm:$0x1] %v2556_v63  ;;  %v3871_v63 = vld [vmem:[%s5024_s12 + $0x10] sm:$0xff]  }
 0x3f2   : > { %v3884_v7 = vpop.eup %3883  ;;  %v2535_v16 = vrot.slane %v2534_v43, 1 }
 0x3f3   : > { %v2505_v4 = vmul.f32 %v3884_v7, %v2502_v27  ;;  %v2560_v44 = vmul.f32 %v2557_v34, %v2557_v34  ;;  %v2561_v51 = vmul.f32 %v2558_v30, %v2558_v30  ;;  %v2562_v41 = vmul.f32 %v2559_v11, %v2559_v11  ;;  %v3205_v34 = vld [vmem:[%s5023_s11] ss:$0 sm:$0xff] }
 0x3f4   : > { %v2536_v28 = vadd.f32 %v2535_v16, %v2534_v43  ;;  %v3872_v43 = vld [vmem:[%s5024_s12 + $0x18] sm:$0xff]  }
 0x3f5   : > { %v2507_v21 = vsel %vm2506_vm1, %v2502_v27, %v2505_v4  ;;  %v2563_v37 = vadd.f32 %v2561_v51, %v2560_v44  ;;  %v2564_v40 = vsel %vm1149_vm3, %v2562_v41, 0.0 }
 0x3f6   : > { %v2510_v8 = vsel %vm2508_vm2, %v2509_v13, %v2507_v21  ;;  %v2537_v14 = vmul.f32 0.05263158, %v2536_v28 }
 0x3f7   : > { %2511 = vst [vmem:[#allocation3 + $0x5] sm:$0x1] %v2510_v8  ;;  %v2565_v53 = vadd.f32 %v2564_v40, %v2563_v37 }
 0x3f8   : > { %v2582_v9 = vld [vmem:[#allocation2] sm:$0xff]  ;;  %3885 = vrsqrt.f32 %v2537_v14  ;;  %vm2541_vm4 = vcmp.eq.f32.partialorder %v2537_v14, inf  ;;  %v2544_v5 = vand.u32 2147483648, %v2537_v14  ;;  %vm2543_vm3 = vcmp.eq.f32.partialorder %v2537_v14, 0.0 }
 0x3f9   : > { %v2566_v45 = vrot.slane %v2565_v53, 4  ;;  %v2583_v54 = vpack.c.bf16 %v2582_v9, %v2582_v9 }
 0x3fb   : > { %v2567_v48 = vadd.f32 %v2566_v45, %v2565_v53  ;;  %3662 = vmatmul.mubr.bf16.vlgmr.msra.gmra.mrb[128].mxu0 %v2583_v54 }
 0x3fc   : > { %3693 = vmatprep.mubr.msk.bf16.mxu0 %vm3955_vm6, %v3954_v15  ;;  %3686 = vmatpush3.bf16.msra.mxu0 %v3869_v35 }
 0x3fd   : > { %v2568_v52 = vrot.slane %v2567_v48, 2  ;;  %3687 = vmatprep.subr.bf16.mxu0 %v3954_v15 }
 0x3ff   : > { %v2569_v1 = vadd.f32 %v2568_v52, %v2567_v48 }
 0x400   : > { %3688 = vmatpush3.bf16.msra.mxu0 %v3870_v39 }
 0x401   : > { %v2570_v50 = vrot.slane %v2569_v1, 1  ;;  %3689 = vmatprep.subr.bf16.mxu0 %v3954_v15 }
 0x402   : > { %v3886_v56 = vpop.eup %3885 }
 0x403   : > { %v2540_v26 = vmul.f32 %v3886_v56, %v2537_v14  ;;  %v2571_v20 = vadd.f32 %v2570_v50, %v2569_v1 }
 0x404   : > { %3690 = vmatpush3.bf16.msra.mxu0 %v3871_v63 }
 0x405   : > { %v2542_v32 = vsel %vm2541_vm4, %v2537_v14, %v2540_v26  ;;  %v2572_v12 = vmul.f32 0.05263158, %v2571_v20  ;;  %3691 = vmatprep.subr.bf16.mxu0 %v3954_v15 }
 0x406   : > { %v2545_v25 = vsel %vm2543_vm3, %v2544_v5, %v2542_v32 }
 0x407   : > { %2546 = vst [vmem:[#allocation3 + $0x6] sm:$0x1] %v2545_v25  ;;  %3887 = vrsqrt.f32 %v2572_v12  ;;  %vm2576_vm5 = vcmp.eq.f32.partialorder %v2572_v12, inf  ;;  %v2579_v46 = vand.u32 2147483648, %v2572_v12  ;;  %vm2578_vm7 = vcmp.eq.f32.partialorder %v2572_v12, 0.0 }
 0x408   : > { %3692 = vmatpush3.bf16.msra.mxu0 %v3872_v43 }
 0x411   : > { %v3888_v31 = vpop.eup %3887 }
 0x412   : > { %v2575_v10 = vmul.f32 %v3888_v31, %v2572_v12 }
 0x414   : > { %v2577_v61 = vsel %vm2576_vm5, %v2572_v12, %v2575_v10 }
 0x415   : > { %v2580_v22 = vsel %vm2578_vm7, %v2579_v46, %v2577_v61 }
 0x416   : > { %2581 = vst [vmem:[#allocation3 + $0x7] sm:$0x1] %v2580_v22 }
 0x41d   : > { %v2584_v38 = vld [vmem:[#allocation3] sm:$0xff] }
 0x41e   : > { %v2585_v47 = vpack.c.bf16 %v2584_v38, %v2584_v38 }
 0x420   : > { %3642 = vmatmul.mubr.bf16.vlgmr.msra.gmra.mrb[128].mxu1 %v2585_v47 }
 0x421   : > { %3681 = vmatprep.mubr.msk.bf16.mxu1 %vm3955_vm6, %v3954_v15  ;;  %3666 = vmatpush3.bf16.msra.mxu1 %v3861_v2  ;;  %vm2956_vm6 = vcmask 523264  }
 0x422   : > { %3667 = vmatprep.subr.bf16.mxu1 %v3954_v15 }
 0x425   : > { %3668 = vmatpush3.bf16.msra.mxu1 %v3862_v24 }
 0x426   : > { %3669 = vmatprep.subr.bf16.mxu1 %v3954_v15 }
 0x429   : > { %3670 = vmatpush3.bf16.msra.mxu1 %v3863_v58 }
 0x42a   : > { %3671 = vmatprep.subr.bf16.mxu1 %v3954_v15 }
 0x42d   : > { %3672 = vmatpush3.bf16.msra.mxu1 %v3864_v49 }
 0x42e   : > { %3673 = vmatprep.subr.bf16.mxu1 %v3954_v15 }
 0x431   : > { %3674 = vmatpush3.bf16.msra.mxu1 %v3865_v23 }
 0x432   : > { %3675 = vmatprep.subr.bf16.mxu1 %v3954_v15 }
 0x435   : > { %3676 = vmatpush3.bf16.msra.mxu1 %v3866_v36 }
 0x436   : > { %3677 = vmatprep.subr.bf16.mxu1 %v3954_v15 }
 0x439   : > { %3678 = vmatpush3.bf16.msra.mxu1 %v3867_v33 }
 0x43a   : > { %3679 = vmatprep.subr.bf16.mxu1 %v3954_v15  ;;  %v3214_v15 = vld [vmem:[%s5025_s13] ss:$0 sm:$0xff] }
 0x43d   : > { %3680 = vmatpush3.bf16.msra.mxu1 %v3868_v17 }
 0x4ce   : > { %v2788_v18 = vpop.f32.mrb[128].mxu0 }
 0x4cf   : > { %v3663_v27 = vpop.f32.mrb[129].mxu0 }
 0x4d0   : > { %v2791_v0 = vpop.f32.mrb[130].mxu0 }
 0x4d1   : > { %v3664_v55 = vpop.f32.mrb[131].mxu0 }
 0x4f3   : > { %v2700_v59 = vpop.f32.mrb[128].mxu1 }
 0x4f4   : > { %v2789_v57 = vadd.f32 %v2788_v18, %v2700_v59  ;;  %v3643_v62 = vpop.f32.mrb[129].mxu1 }
 0x4f5   : > { %v2703_v19 = vpop.f32.mrb[130].mxu1 }
 0x4f6   : > { %v2801_v29 = vadd.f32 %v3204_v60, %v2789_v57  ;;  %v3644_v3 = vpop.f32.mrb[131].mxu1 }
 0x4f8   : > { %v2802_v42 = vmax.f32 %v2801_v29, 0.0 }
 0x4fa   : > { %v2803_v6 = vpack.c.bf16 %v2802_v42, %v2802_v42 }
 0x4fc   : > { %3682 = vmatmul.mubr.bf16.vlgmr.msra.gmra.mrb[132].mxu1 %v2803_v6 }
 0x5cf   : > { %v2909_v30 = vpop.f32.mrb[132].mxu1 }
 0x5d0   : > { %v2910_v11 = vadd.f32 %v3205_v34, %v2909_v30  ;;  %v3683_v7 = vpop.f32.mrb[133].mxu1 }
 0x5d1   : > { %v2912_v4 = vpop.f32.mrb[134].mxu1 }
 0x5d2   : > { %v2915_v16 = vmax.f32 %v2910_v11, 0.0  ;;  %v3684_v44 = vpop.f32.mrb[135].mxu1 }
 0x5d4   : > { %v2916_v51 = vpack.c.bf16 %v2915_v16, %v2915_v16 }
 0x5d6   : > { %3694 = vmatmul.mubr.msk.bf16.vlgmr.msra.gmra.mrb[132].mxu0 %vm2956_vm6, %v2916_v51 }
 0x6a9   : > { %v2994_v13 = vpop.f32.mrb[132].mxu0 }
 0x6aa   : > { %v2995_v41 = vadd.f32 %v3214_v15, %v2994_v13  ;;  %v3695_v21 = vpop.f32.mrb[133].mxu0 }
 0x6ab   : > { %v2997_v28 = vpop.f32.mrb[134].mxu0 }
 0x6ac   : > { %3000 = vst [vmem:[%s460_s18] sm:$0xff] %v2995_v41  ;;  %v3696_v37 = vpop.f32.mrb[135].mxu0 }
 0x6ad   : > { %3902 = shalt.err (!%p3899_p3)
}
 0x6ae   : > { %s3903_s15 = scalar_lea.hbm %s4970_s0, 128  ;;  %s3907_s22 = scalar_lea.hbm %s5026_s14, 256 }
 0x6af   : > { %p3904_p4 = scmp.ne.s32.totalorder %s4970_s0, %s3903_s15  ;;  %p3908_p9 = scmp.lt.u32.totalorder %s4970_s0, %s5026_s14 }
 0x6b0   : > { %p3909_p10 = scmp.lt.u32.totalorder %s3907_s22, %s3903_s15  ;;  %p3911_p12 = scmp.lt.u32.totalorder %s3903_s15, %s4970_s0 }
 0x6b1   : > { %p3905_p7 = pnand %p3904_p4, %p4070_p5 }
 0x6b2   : > { %p3910_p11 = por %p3909_p10, %p3908_p9 }
 0x6b3   : > { %p3906_p8 = pneg %p3905_p7 }
 0x6b4   : > { %p3912_p13 = por %p3911_p12, %p3910_p11 }
 0x6b6   : > { %p3913_p0 = pnand %p3912_p13, %p3906_p8 }
 0x6b8   : > { %3916 = shalt.err (!%p3913_p0)
}
 0x6b9   : > { %3697 = dma.vmem_to_hbm [thread:$0]  (%p4070_p5), %s4972_s20, 128, %s4970_s0, %s3002_s19  }
 0x6ba PF: > { %p3703_p1 = scmp.ge.s32.totalorder %s3951_s16, 2  ;;  %s3027_s17 = sand.u32 1, %s3939_s29  }
 0x6bb   : > { %s3028_s26 = scalar_lea.sflag [#allocation5], %s3027_s17 }
 0x6bc   : > { %p3700_p2 = pnand %p3703_p1, %p4074_p6 }
 0x6be   : > { %3934 = dma.done.wait (!%p3700_p2), %s3028_s26, 128  }
 0x6bf   : > { %3936 = vsyncadd (!%p3700_p2), %s3028_s26, 4294967168  ;;  %s5076_s16 = sld [smem:[#allocation8_spill]]  ;;  %s5077_s27 = sld [smem:[#allocation7_spill]] }
 0x6c0   : > { %s5078_s15 = sld [smem:[#allocation9_spill]]  ;;  %s5079_s29 = smov %s3943_s30 }
 0x6c5   : > { %p24_p3 = scmp.ge.s32.totalorder %s5076_s16, 4   ;;  %s5080_s30 = smov %s5077_s27 }
 0x6c7   :  { %26 = sbr.rel (!%p24_p3) target bundleno = 5 (0x5), region = 111 }
 0x6ce   :  { %3033 = vsyncpa [#allocation5], 1 }
 0x6cf   :  { %3035 = vsyncpa [#allocation5 + $0x1], 1 }

</bundles_post_ra>
